<compile_context>
chip_gen: v7x
topology: tpu7x:2x2x1
jax: 0.10.0
libtpu: 0.0.40
codegen_flags: <defaults>
</compile_context>

<pallas_src>
import math
import numpy as np
import jax
import jax.numpy as jnp
from jax.experimental import pallas as pl
from jax.experimental.pallas import tpu as pltpu


def _round_up(x, m):
    return ((x + m - 1) // m) * m


def _const_spec(shape):
    """VMEM-resident (constant index_map) spec; single-buffered when supported."""
    try:
        return pl.BlockSpec(shape, lambda i: (0, 0), pipeline_mode=pl.Buffered(1))
    except (AttributeError, TypeError):
        return pl.BlockSpec(shape, lambda i: (0, 0))


# ----------------------------------------------------------------------------
# Fused Pallas kernel: 3-layer classifier MLP (+ folded ent_map) + softmax
# ----------------------------------------------------------------------------
def _fused_kge_kernel(x_ref, w1_ref, b1_ref, w2_ref, b2_ref, w3_ref, b3_ref,
                      o_ref):
    cd = w1_ref.dtype                     # MXU operand dtype (bf16 or f32)

    # layer 1: x holds raw gathered [drug | protein] rows (compute dtype);
    # the bias-free ent_map projection is already folded into w1.
    h1 = jnp.dot(x_ref[...], w1_ref[...], preferred_element_type=jnp.float32)
    h1 = jnp.maximum(h1 + b1_ref[...], 0.0)

    # layer 2
    h2 = jnp.dot(h1.astype(cd), w2_ref[...], preferred_element_type=jnp.float32)
    h2 = jnp.maximum(h2 + b2_ref[...], 0.0)

    # layer 3 (lane-dense: W3 zero-padded / b3 -1e30-padded to 128 columns;
    # pad bias stays f32, so exp(pad - max) == 0 exactly in the softmax)
    logits = jnp.dot(h2.astype(cd), w3_ref[...],
                     preferred_element_type=jnp.float32)
    logits = logits + b3_ref[...]

    m = jnp.max(logits, axis=-1, keepdims=True)
    e = jnp.exp(logits - m)
    o_ref[...] = (e / jnp.sum(e, axis=-1, keepdims=True)).astype(o_ref.dtype)


def fused_pair_classifier(x, w1f, b1, w2_t, b2, w3_pad, b3_pad, *, tile_p=256):
    """Tiled fused forward over the pair dimension.

    x       : (P, 2E) gathered [drug | protein] raw entity rows (compute dtype)
    w1f     : (2E, 1024) layer-1 weight with ent_map folded in (compute dtype)
    w2_t    : (1024, 512) ; w3_pad : (512, 128) zero-padded
    b1/b2   : (1, out) f32 ; b3_pad : (1, 128) f32, pad lanes = -1e30
    Returns (P, 2) softmax probabilities (f32).
    """
    P, E2 = x.shape
    c_pad = w3_pad.shape[1]

    # >= 2 grid steps whenever possible so megacore (v7x) can shard the grid.
    tp = min(tile_p, _round_up(max((P + 1) // 2, 1), 8))
    tp = max(_round_up(tp, 8), 8)
    p_pad = _round_up(P, tp)
    if p_pad != P:
        x = jnp.pad(x, ((0, p_pad - P), (0, 0)))

    row = lambda r, c: pl.BlockSpec((r, c), lambda i: (i, 0))   # pair-tiled

    out = pl.pallas_call(
        _fused_kge_kernel,
        out_shape=jax.ShapeDtypeStruct((p_pad, c_pad), jnp.float32),
        grid=(p_pad // tp,),
        in_specs=[
            row(tp, E2),
            _const_spec(w1f.shape), _const_spec(b1.shape),
            _const_spec(w2_t.shape), _const_spec(b2.shape),
            _const_spec(w3_pad.shape), _const_spec(b3_pad.shape),
        ],
        out_specs=row(tp, c_pad),
        compiler_params=pltpu.CompilerParams(
            dimension_semantics=("parallel",),
            vmem_limit_bytes=32 * 1024 * 1024,
        ),
    )(x, w1f, b1, w2_t, b2, w3_pad, b3_pad)
    return out[:P, :2]


# ----------------------------------------------------------------------------
# Model (parameters + forward glue)
# ----------------------------------------------------------------------------
class KGEModelPallas:
    """graph_on=0, project_on=1, layer_feat_fusion='none' configuration."""

    def __init__(self, key, nentity, nrelation, ent_emb, rel_emb,
                 embed_dim, hidden_dim, compute_dtype=jnp.bfloat16,
                 tile_p=256):
        assert embed_dim == hidden_dim, (
            "classifier in_dim is hidden_dim*2; with graph_on=0 the features "
            "feeding it have embed_dim columns, so embed_dim must equal "
            "hidden_dim")
        self.nentity, self.nrelation = nentity, nrelation
        self.embed_dim, self.hidden_dim = embed_dim, hidden_dim
        self.tile_p = tile_p

        ks = jax.random.split(key, 8)

        # --- embedding tables (mirrors the PyTorch init: entity_embedding is
        #     uniform-initialized twice, the surviving bound uses rel_emb;
        #     relation_embedding is never re-initialized -> stays zero) ---
        a = 6.0 / math.sqrt(rel_emb)
        self.entity_embedding = jax.random.uniform(
            ks[0], (nentity, ent_emb), jnp.float32, minval=-a, maxval=a)
        self.relation_embedding = jnp.zeros((nrelation, rel_emb), jnp.float32)

        # --- projection maps (xavier_normal_, gain=1.414), bias-free ---
        def xavier_normal(k, fan_out, fan_in, gain):
            std = gain * math.sqrt(2.0 / (fan_in + fan_out))
            return std * jax.random.normal(k, (fan_out, fan_in), jnp.float32)

        self.ent_map_w = xavier_normal(ks[1], embed_dim, ent_emb, 1.414)
        self.rel_map_w = xavier_normal(ks[2], embed_dim, rel_emb, 1.414)

        # --- classifier Linear(2H,1024) ReLU Linear(1024,512) ReLU Linear(512,2)
        def linear_init(k, fan_out, fan_in):
            kw, kb = jax.random.split(k)
            bound = 1.0 / math.sqrt(fan_in)
            w = jax.random.uniform(kw, (fan_out, fan_in), jnp.float32,
                                   minval=-bound, maxval=bound)
            b = jax.random.uniform(kb, (fan_out,), jnp.float32,
                                   minval=-bound, maxval=bound)
            return w, b

        in_dim = hidden_dim * 2
        self.cls_w1, self.cls_b1 = linear_init(ks[3], 1024, in_dim)
        self.cls_w2, self.cls_b2 = linear_init(ks[4], 512, 1024)
        self.cls_w3, self.cls_b3 = linear_init(ks[5], 2, 512)

        # --- kernel-ready copies (hoisted out of forward): ent_map fold in
        #     f32, transposes, compute-dtype casts, lane padding ---
        cd = compute_dtype
        H = hidden_dim
        # compute-dtype entity table for bf16 gather/stream
        self._entity_embedding_c = jnp.asarray(self.entity_embedding, cd)

        w1_t = self.cls_w1.T                                     # (2H, 1024)
        wen_t = self.ent_map_w.T                                 # (E, H)
        w_d = wen_t @ w1_t[:H]                                   # (E, 1024) f32
        w_p = wen_t @ w1_t[H:]                                   # (E, 1024) f32
        self._w1f = jnp.asarray(jnp.concatenate([w_d, w_p], axis=0), cd)  # (2E,1024)
        self._w2_t = jnp.asarray(self.cls_w2.T, cd)              # (1024, 512)
        self._b1 = self.cls_b1.reshape(1, -1)                    # f32
        self._b2 = self.cls_b2.reshape(1, -1)                    # f32

        c_pad = 128
        w3_t = self.cls_w3.T                                     # (512, 2)
        w3_pad = jnp.zeros((w3_t.shape[0], c_pad), jnp.float32).at[:, :2].set(w3_t)
        self._w3_pad = jnp.asarray(w3_pad, cd)
        self._b3_pad = jnp.full((1, c_pad), -1e30,
                                jnp.float32).at[0, :2].set(self.cls_b3)

    @staticmethod
    def precompute_indices(type_mask_np, index_np):
        """One-time host-side resolution of the boolean-mask selection + pair
        gather (data-dependent shapes) into flat entity-row ids on device."""
        drug_pos = np.nonzero(np.asarray(type_mask_np) == 0)[0]
        prot_pos = np.nonzero(np.asarray(type_mask_np) == 1)[0]
        head_ids = drug_pos[np.asarray(index_np[0])]
        tail_ids = prot_pos[np.asarray(index_np[1])]
        return (jnp.asarray(head_ids, jnp.int32),
                jnp.asarray(tail_ids, jnp.int32))

    def forward(self, head_ids, tail_ids):
        # gather-before-project: the bias-free projection is folded into the
        # layer-1 weights, so only the 2*P used raw rows are gathered (bf16)
        # and streamed straight into the fused kernel as one (P, 2E) operand.
        drug_raw = jnp.take(self._entity_embedding_c, head_ids, axis=0)
        prot_raw = jnp.take(self._entity_embedding_c, tail_ids, axis=0)
        x = jnp.concatenate([drug_raw, prot_raw], axis=1)        # (P, 2E)
        # (relation projection dropped: graph_on == 0 -> never consumed.)
        return fused_pair_classifier(
            x, self._w1f, self._b1, self._w2_t, self._b2,
            self._w3_pad, self._b3_pad, tile_p=self.tile_p)

    # pure-JAX f32 reference mirroring the PyTorch forward (project-all,
    # boolean-mask select, pair gather, MLP, softmax)
    def forward_ref(self, type_mask_np, index_np):
        ent = self.entity_embedding @ self.ent_map_w.T
        drug = ent[np.nonzero(np.asarray(type_mask_np) == 0)[0]]
        prot = ent[np.nonzero(np.asarray(type_mask_np) == 1)[0]]
        comb = jnp.concatenate(
            (drug[np.asarray(index_np[0])], prot[np.asarray(index_np[1])]),
            axis=1)
        h = jnp.maximum(comb @ self.cls_w1.T + self.cls_b1, 0.0)
        h = jnp.maximum(h @ self.cls_w2.T + self.cls_b2, 0.0)
        return jax.nn.softmax(h @ self.cls_w3.T + self.cls_b3, axis=-1)


# ----------------------------------------------------------------------------
if __name__ == "__main__":
    key = jax.random.PRNGKey(0)

    # small, module-consistent shapes
    NENTITY, NRELATION = 64, 4
    ENT_EMB, REL_EMB = 24, 16
    EMBED_DIM = HIDDEN_DIM = 32
    NUM_PAIRS = 48                       # with tile_p=16 -> pair grid of 3 tiles

    model = KGEModelPallas(key, NENTITY, NRELATION, ENT_EMB, REL_EMB,
                           EMBED_DIM, HIDDEN_DIM, tile_p=16)

    # first half of entities are drugs (type 0), second half proteins (type 1)
    type_mask = np.zeros((NENTITY,), dtype=np.int32)
    type_mask[NENTITY // 2:] = 1
    rng = np.random.RandomState(0)
    index = np.stack([
        rng.randint(0, NENTITY // 2, size=NUM_PAIRS),
        rng.randint(0, NENTITY // 2, size=NUM_PAIRS),
    ]).astype(np.int32)

    head_ids, tail_ids = KGEModelPallas.precompute_indices(type_mask, index)
    probs = jax.block_until_ready(model.forward(head_ids, tail_ids))

    ref = jax.block_until_ready(model.forward_ref(type_mask, index))
    # bf16 MXU operands / bf16 gathered rows vs. f32 reference
    np.testing.assert_allclose(np.asarray(probs), np.asarray(ref),
                               rtol=2e-2, atol=2e-2)
    assert probs.shape == (NUM_PAIRS, 2)
    np.testing.assert_allclose(np.asarray(probs).sum(-1),
                               np.ones(NUM_PAIRS), rtol=1e-3, atol=1e-3)

    print("KERNEL_OK")
</pallas_src>

<mosaic_0001>
module attributes {stable_mosaic.version = 11 : i64} {
  func.func @_fused_kge_kernel(%arg0: i32, %arg1: memref<16x48xbf16, #tpu.memory_space<vmem>>, %arg2: memref<48x1024xbf16, #tpu.memory_space<vmem>>, %arg3: memref<1x1024xf32, #tpu.memory_space<vmem>>, %arg4: memref<1024x512xbf16, #tpu.memory_space<vmem>>, %arg5: memref<1x512xf32, #tpu.memory_space<vmem>>, %arg6: memref<512x128xbf16, #tpu.memory_space<vmem>>, %arg7: memref<1x128xf32, #tpu.memory_space<vmem>>, %arg8: memref<16x128xf32, #tpu.memory_space<vmem>>) attributes {dimension_semantics = [#tpu.dimension_semantics<parallel>], iteration_bounds = array<i64: 3>, scalar_prefetch = 0 : i64, scratch_operands = 0 : i64, tpu.core_type = #tpu.core_type<tc>, window_params = [{transform_indices = @transform_0, window_bounds = array<i64: 16, 48>}, {pipeline_mode = #tpu.pipeline_mode<synchronous>, transform_indices = @transform_1, window_bounds = array<i64: 48, 1024>}, {pipeline_mode = #tpu.pipeline_mode<synchronous>, transform_indices = @transform_2, window_bounds = array<i64: 1, 1024>}, {pipeline_mode = #tpu.pipeline_mode<synchronous>, transform_indices = @transform_3, window_bounds = array<i64: 1024, 512>}, {pipeline_mode = #tpu.pipeline_mode<synchronous>, transform_indices = @transform_4, window_bounds = array<i64: 1, 512>}, {pipeline_mode = #tpu.pipeline_mode<synchronous>, transform_indices = @transform_5, window_bounds = array<i64: 512, 128>}, {pipeline_mode = #tpu.pipeline_mode<synchronous>, transform_indices = @transform_6, window_bounds = array<i64: 1, 128>}, {transform_indices = @transform_7, window_bounds = array<i64: 16, 128>}]} {
    %c0 = arith.constant 0 : index
    %c0_0 = arith.constant 0 : index
    %0 = vector.load %arg1[%c0, %c0_0] : memref<16x48xbf16, #tpu.memory_space<vmem>>, vector<16x48xbf16>
    %c0_1 = arith.constant 0 : index
    %c0_2 = arith.constant 0 : index
    %1 = vector.load %arg2[%c0_1, %c0_2] : memref<48x1024xbf16, #tpu.memory_space<vmem>>, vector<48x1024xbf16>
    %cst = arith.constant dense<0.000000e+00> : vector<16x1024xf32>
    %2 = tpu.matmul %0, %1, %cst {dimension_numbers = #tpu.dot_dimension_numbers<[1], [0], [0], [1], [0, 0, 1, 1], [], []>} : vector<16x48xbf16>, vector<48x1024xbf16>, vector<16x1024xf32> -> vector<16x1024xf32>
    %c0_3 = arith.constant 0 : index
    %c0_4 = arith.constant 0 : index
    %3 = vector.load %arg3[%c0_3, %c0_4] : memref<1x1024xf32, #tpu.memory_space<vmem>>, vector<1x1024xf32>
    %4 = vector.broadcast %3 : vector<1x1024xf32> to vector<16x1024xf32>
    %5 = arith.addf %2, %4 : vector<16x1024xf32>
    %cst_5 = arith.constant 0.000000e+00 : f32
    %6 = vector.broadcast %cst_5 : f32 to vector<16x1024xf32>
    %7 = arith.maximumf %5, %6 : vector<16x1024xf32>
    %8 = arith.truncf %7 : vector<16x1024xf32> to vector<16x1024xbf16>
    %c0_6 = arith.constant 0 : index
    %c0_7 = arith.constant 0 : index
    %9 = vector.load %arg4[%c0_6, %c0_7] : memref<1024x512xbf16, #tpu.memory_space<vmem>>, vector<1024x512xbf16>
    %cst_8 = arith.constant dense<0.000000e+00> : vector<16x512xf32>
    %10 = tpu.matmul %8, %9, %cst_8 {dimension_numbers = #tpu.dot_dimension_numbers<[1], [0], [0], [1], [0, 0, 1, 1], [], []>} : vector<16x1024xbf16>, vector<1024x512xbf16>, vector<16x512xf32> -> vector<16x512xf32>
    %c0_9 = arith.constant 0 : index
    %c0_10 = arith.constant 0 : index
    %11 = vector.load %arg5[%c0_9, %c0_10] : memref<1x512xf32, #tpu.memory_space<vmem>>, vector<1x512xf32>
    %12 = vector.broadcast %11 : vector<1x512xf32> to vector<16x512xf32>
    %13 = arith.addf %10, %12 : vector<16x512xf32>
    %cst_11 = arith.constant 0.000000e+00 : f32
    %14 = vector.broadcast %cst_11 : f32 to vector<16x512xf32>
    %15 = arith.maximumf %13, %14 : vector<16x512xf32>
    %16 = arith.truncf %15 : vector<16x512xf32> to vector<16x512xbf16>
    %c0_12 = arith.constant 0 : index
    %c0_13 = arith.constant 0 : index
    %17 = vector.load %arg6[%c0_12, %c0_13] : memref<512x128xbf16, #tpu.memory_space<vmem>>, vector<512x128xbf16>
    %cst_14 = arith.constant dense<0.000000e+00> : vector<16x128xf32>
    %18 = tpu.matmul %16, %17, %cst_14 {dimension_numbers = #tpu.dot_dimension_numbers<[1], [0], [0], [1], [0, 0, 1, 1], [], []>} : vector<16x512xbf16>, vector<512x128xbf16>, vector<16x128xf32> -> vector<16x128xf32>
    %c0_15 = arith.constant 0 : index
    %c0_16 = arith.constant 0 : index
    %19 = vector.load %arg7[%c0_15, %c0_16] : memref<1x128xf32, #tpu.memory_space<vmem>>, vector<1x128xf32>
    %20 = vector.broadcast %19 : vector<1x128xf32> to vector<16x128xf32>
    %21 = arith.addf %18, %20 : vector<16x128xf32>
    %cst_17 = arith.constant dense<0xFF800000> : vector<16xf32>
    %22 = vector.multi_reduction <maximumf>, %21, %cst_17 [1] : vector<16x128xf32> to vector<16xf32>
    %23 = vector.shape_cast %22 : vector<16xf32> to vector<16x1xf32>
    %24 = vector.broadcast %23 : vector<16x1xf32> to vector<16x128xf32>
    %25 = arith.subf %21, %24 : vector<16x128xf32>
    %26 = math.exp %25 : vector<16x128xf32>
    %cst_18 = arith.constant dense<0.000000e+00> : vector<16xf32>
    %27 = vector.multi_reduction <add>, %26, %cst_18 [1] : vector<16x128xf32> to vector<16xf32>
    %28 = vector.shape_cast %27 : vector<16xf32> to vector<16x1xf32>
    %29 = vector.broadcast %28 : vector<16x1xf32> to vector<16x128xf32>
    %30 = arith.divf %26, %29 : vector<16x128xf32>
    %c0_19 = arith.constant 0 : index
    %c0_20 = arith.constant 0 : index
    %31 = vector.load %arg8[%c0_19, %c0_20] : memref<16x128xf32, #tpu.memory_space<vmem>>, vector<16x128xf32>
    tpu.vector_store %arg8[%c0_19, %c0_20], %30 {strides = array<i32>} : memref<16x128xf32, #tpu.memory_space<vmem>>, vector<16x128xf32>,
    return
  }
  func.func @transform_0(%arg0: i32) -> (i32, i32) {
    %c0_i32 = arith.constant 0 : i32
    %c0_i32_0 = arith.constant 0 : i32
    return %arg0, %c0_i32 : i32, i32
  }
  func.func @transform_1(%arg0: i32) -> (i32, i32) {
    %c0_i32 = arith.constant 0 : i32
    %c0_i32_0 = arith.constant 0 : i32
    %c0_i32_1 = arith.constant 0 : i32
    return %c0_i32, %c0_i32_0 : i32, i32
  }
  func.func @transform_2(%arg0: i32) -> (i32, i32) {
    %c0_i32 = arith.constant 0 : i32
    %c0_i32_0 = arith.constant 0 : i32
    %c0_i32_1 = arith.constant 0 : i32
    return %c0_i32, %c0_i32_0 : i32, i32
  }
  func.func @transform_3(%arg0: i32) -> (i32, i32) {
    %c0_i32 = arith.constant 0 : i32
    %c0_i32_0 = arith.constant 0 : i32
    %c0_i32_1 = arith.constant 0 : i32
    return %c0_i32, %c0_i32_0 : i32, i32
  }
  func.func @transform_4(%arg0: i32) -> (i32, i32) {
    %c0_i32 = arith.constant 0 : i32
    %c0_i32_0 = arith.constant 0 : i32
    %c0_i32_1 = arith.constant 0 : i32
    return %c0_i32, %c0_i32_0 : i32, i32
  }
  func.func @transform_5(%arg0: i32) -> (i32, i32) {
    %c0_i32 = arith.constant 0 : i32
    %c0_i32_0 = arith.constant 0 : i32
    %c0_i32_1 = arith.constant 0 : i32
    return %c0_i32, %c0_i32_0 : i32, i32
  }
  func.func @transform_6(%arg0: i32) -> (i32, i32) {
    %c0_i32 = arith.constant 0 : i32
    %c0_i32_0 = arith.constant 0 : i32
    %c0_i32_1 = arith.constant 0 : i32
    return %c0_i32, %c0_i32_0 : i32, i32
  }
  func.func @transform_7(%arg0: i32) -> (i32, i32) {
    %c0_i32 = arith.constant 0 : i32
    %c0_i32_0 = arith.constant 0 : i32
    return %arg0, %c0_i32 : i32, i32
  }
}

</mosaic_0001>

<bundles_post_ra>
// kernel: tpu_custom_call.1
= control target key start
LH: loop header
LB: loop body
LE: loop exit
PB: predicated region body
PF: predicated region fallthrough
CT: control target
= control target key end

     0   :  { %s4717_s0 = inlined_call_operand.hbm [shape: bf16[48,48], index: 0, kind: input, shape index: {}]   ;;  %s4718_s1 = inlined_call_operand.hbm [shape: bf16[48,1024], index: 1, kind: input, shape index: {}]   ;;  %s4719_s2 = inlined_call_operand.hbm [shape: f32[1,1024], index: 2, kind: input, shape index: {}]   ;;  %s4720_s3 = inlined_call_operand.hbm [shape: bf16[1024,512], index: 3, kind: input, shape index: {}]   ;;  %s4721_s4 = inlined_call_operand.vmem [shape: f32[1,512], index: 4, kind: input, shape index: {}]   ;;  %s4722_s5 = inlined_call_operand.hbm [shape: bf16[512,128], index: 5, kind: input, shape index: {}]   ;;  %s4723_s6 = inlined_call_operand.vmem [shape: f32[1,128], index: 6, kind: input, shape index: {}]   ;;  %s4724_s7 = inlined_call_operand.hbm [shape: f32[48,128], index: 7, kind: output, shape index: {}]  }
   0x1   :  { %4728 = sst [smem:[#allocation16_spill]] %s4718_s1 }
   0x2   :  { %12 = vsyncpa [#allocation3], 0 }
   0x3   :  { %14 = vsyncpa [#allocation3 + $0x1], 0 }
   0x4   :  { %15 = vsyncpa [#allocation6], 0 }
   0x5   :  { %16 = vsyncpa [#allocation9], 0 }
   0x6   :  { %17 = vsyncpa [#allocation4], 0 }
   0x7   :  { %19 = vsyncpa [#allocation4 + $0x1], 0  ;;  %s4365_s24 = smov 0   ;;  %s4367_s25 = smov 0  }
   0x8   :  { %s4369_s26 = smov 0   ;;  %s4371_s27 = smov 0  }
   0x9 LB: > { %s4386_s28 = sadd.s32 4294967295, %s4308_s27   ;;  %s3153_s29 = sadd.s32 4294967294, %s4308_s27   ;;  %s4308_s27 = sphi %s4371_s27, %s4748_s27   ;;  %s4304_s26 = sphi %s4369_s26, %s4747_s26   ;;  %s4300_s25 = sphi %s4367_s25, %s4746_s25   ;;  %s4296_s24 = sphi %s4365_s24, %s4745_s24  }
   0xa   : > { %p45_p0 = scmp.ne.s32.totalorder %s4300_s25, %s4296_s24  ;;  %p4725_p1 = scmp.eq.s32.totalorder %s4386_s28, 0 }
   0xb   : > { %p201_p3 = scmp.eq.s32.totalorder %s3153_s29, 2  ;;  %p3154_p5 = scmp.ge.s32.totalorder %s4308_s27, 1 }
   0xc   : > { %p4395_p4 = por %p4725_p1, %p45_p0  ;;  %p208_p7 = scmp.lt.s32.totalorder %s4308_s27, 4 }
   0xd   : > { %p4400_p6 = por %p201_p3, %p45_p0  ;;  %s4310_s10 = smov [#allocation5]  }
   0xe   : > { %s4729_s30 = scalar_select %p4395_p4, 1, 0 }
   0xf   : > { %s4730_s8 = scalar_select %p4400_p6, 1, 0 }
  0x10   : > { %p4405_p8 = pnand %p3154_p5, %p208_p7  ;;  %s220_s11 = sshll.u32 %s4310_s10, 4  ;;  %s221_s11 = int_to_ptr.vmem [resolvable:$true] %s220_s11 }
  0x11   : > { %s4311_s13 = smov [#allocation8]   ;;  %s4733_s1 = sld [smem:[#allocation16_spill]] }
  0x12   : > { %s4731_s9 = scalar_select %p4405_p8, 1, 0 }
  0x13   : > { %p3591_p9 = pneg %p4405_p8  ;;  %s244_s14 = sshll.u32 %s4311_s13, 4  ;;  %s4417_s14 = int_to_ptr.vmem [resolvable:$true] %s244_s14 }
  0x15   : > { %p4413_p10 = pnand %p3591_p9, %p4725_p1 }
  0x17   : > { %s4092_s17 = scalar_lea.hbm %s4733_s1, 3072  ;;  %p4427_p12 = pneg %p4413_p10 }
  0x18   : > { %p4093_p11 = scmp.ne.s32.totalorder %s4733_s1, %s4092_s17  ;;  %p4099_p3 = scmp.lt.u32.totalorder %s4092_s17, %s4733_s1 }
  0x1a   : > { %p4095_p13 = pnand %p4427_p12, %p4093_p11 }
  0x1c   : > { %p4096_p0 = pneg %p4095_p13 }
  0x1e   : > { %p4101_p5 = pnand %p4099_p3, %p4096_p0 }
  0x20   : > { %4104 = shalt.err (!%p4101_p5)
}
  0x21   : > { %s4105_s23 = scalar_lea.vmem %s221_s11, 3072  ;;  %p4113_p2 = scmp.lt.s32.totalorder %s221_s11, %s221_s11 }
  0x22   : > { %p4106_p7 = scmp.ne.s32.totalorder %s221_s11, %s4105_s23  ;;  %p4114_p6 = scmp.lt.s32.totalorder %s4105_s23, %s4105_s23 }
  0x24   : > { %p4108_p9 = pnand %p4106_p7, %p4427_p12  ;;  %p4115_p4 = por %p4114_p6, %p4113_p2 }
  0x26   : > { %p4109_p1 = pneg %p4108_p9 }
  0x28   : > { %p4116_p8 = pnand %p4115_p4, %p4109_p1 }
  0x2a   : > { %4119 = shalt.err (!%p4116_p8)
}
  0x2b   : > { %s4312_s29 = smov 512   ;;  %s4313_s10 = smov 32  }
  0x2c   : > { %3594 = dma.hbm_to_vmem [thread:$0]  (!%p4413_p10), %s4733_s1, 3072, %s221_s11, [#allocation6], %s4312_s29, %s4312_s29, %s4313_s10  }
  0x2d   : > { %s4120_s18 = scalar_lea.hbm %s4720_s3, 32768 }
  0x2e   : > { %p4121_p11 = scmp.ne.s32.totalorder %s4720_s3, %s4120_s18  ;;  %p4127_p4 = scmp.lt.u32.totalorder %s4120_s18, %s4720_s3 }
  0x30   : > { %p4123_p1 = pnand %p4121_p11, %p4427_p12 }
  0x32   : > { %p4124_p2 = pneg %p4123_p1 }
  0x34   : > { %p4129_p6 = pnand %p4127_p4, %p4124_p2 }
  0x36   : > { %4132 = shalt.err (!%p4129_p6)
}
  0x37   : > { %s4133_s11 = scalar_lea.vmem %s4417_s14, 32768  ;;  %p4141_p3 = scmp.lt.s32.totalorder %s4417_s14, %s4417_s14 }
  0x38   : > { %p4134_p8 = scmp.ne.s32.totalorder %s4417_s14, %s4133_s11  ;;  %p4142_p5 = scmp.lt.s32.totalorder %s4133_s11, %s4133_s11 }
  0x3a   : > { %p4136_p13 = pnand %p4134_p8, %p4427_p12  ;;  %p4143_p7 = por %p4142_p5, %p4141_p3 }
  0x3c   : > { %p4137_p0 = pneg %p4136_p13 }
  0x3e   : > { %p4144_p9 = pnand %p4143_p7, %p4137_p0 }
  0x40   : > { %4147 = shalt.err (!%p4144_p9)
}
  0x41   : > { %s4314_s29 = smov 256   ;;  %s4315_s10 = smov 16  }
  0x42   : > { %3600 = dma.hbm_to_vmem [thread:$0]  (!%p4413_p10), %s4720_s3, 32768, %s4417_s14, [#allocation9], %s4314_s29, %s4314_s29, %s4315_s10  }
  0x43   : > { %s4316_s16 = smov [#allocation7]   ;;  %s4317_s18 = smov [#allocation10]  }
  0x44   : > { %s234_s17 = sshll.u32 %s4316_s16, 4  ;;  %s260_s19 = sshll.u32 %s4317_s18, 4  ;;  %s235_s17 = int_to_ptr.vmem [resolvable:$true] %s234_s17  ;;  %s4466_s19 = int_to_ptr.vmem [resolvable:$true] %s260_s19 }
  0x45   : > { %s4148_s23 = scalar_lea.hbm %s4719_s2, 128 }
  0x46   : > { %p4149_p11 = scmp.ne.s32.totalorder %s4719_s2, %s4148_s23  ;;  %p4155_p4 = scmp.lt.u32.totalorder %s4148_s23, %s4719_s2 }
  0x48   : > { %p4151_p1 = pnand %p4149_p11, %p4427_p12 }
  0x4a   : > { %p4152_p2 = pneg %p4151_p1 }
  0x4c   : > { %p4157_p6 = pnand %p4155_p4, %p4152_p2 }
  0x4e   : > { %4160 = shalt.err (!%p4157_p6)
}
  0x4f   : > { %s4161_s29 = scalar_lea.vmem %s235_s17, 128  ;;  %p4169_p3 = scmp.lt.s32.totalorder %s235_s17, %s235_s17 }
  0x50   : > { %p4162_p8 = scmp.ne.s32.totalorder %s235_s17, %s4161_s29  ;;  %p4170_p5 = scmp.lt.s32.totalorder %s4161_s29, %s4161_s29 }
  0x52   : > { %p4164_p13 = pnand %p4162_p8, %p4427_p12  ;;  %p4171_p7 = por %p4170_p5, %p4169_p3 }
  0x54   : > { %p4165_p0 = pneg %p4164_p13 }
  0x56   : > { %p4172_p9 = pnand %p4171_p7, %p4165_p0 }
  0x58   : > { %4175 = shalt.err (!%p4172_p9)
}
  0x59   : > { %3597 = dma.hbm_to_vmem [thread:$0]  (!%p4413_p10), %s4719_s2, 128, %s235_s17, [#allocation6]  }
  0x5a   : > { %s4176_s18 = scalar_lea.hbm %s4722_s5, 4096 }
  0x5b   : > { %p4177_p11 = scmp.ne.s32.totalorder %s4722_s5, %s4176_s18  ;;  %p4183_p4 = scmp.lt.u32.totalorder %s4176_s18, %s4722_s5 }
  0x5d   : > { %p4179_p1 = pnand %p4177_p11, %p4427_p12 }
  0x5f   : > { %p4180_p2 = pneg %p4179_p1 }
  0x61   : > { %p4185_p6 = pnand %p4183_p4, %p4180_p2 }
  0x63   : > { %4188 = shalt.err (!%p4185_p6)
}
  0x64   : > { %s4189_s17 = scalar_lea.vmem %s4466_s19, 4096  ;;  %p4197_p3 = scmp.lt.s32.totalorder %s4466_s19, %s4466_s19 }
  0x65   : > { %p4190_p8 = scmp.ne.s32.totalorder %s4466_s19, %s4189_s17  ;;  %p4198_p5 = scmp.lt.s32.totalorder %s4189_s17, %s4189_s17 }
  0x67   : > { %p4192_p13 = pnand %p4190_p8, %p4427_p12  ;;  %p4199_p7 = por %p4198_p5, %p4197_p3 }
  0x69   : > { %p4193_p0 = pneg %p4192_p13 }
  0x6b   : > { %p4200_p9 = pnand %p4199_p7, %p4193_p0 }
  0x6d   : > { %4203 = shalt.err (!%p4200_p9)
}
  0x6e   : > { %s4318_s13 = smov 64   ;;  %s4319_s20 = smov 4  }
  0x6f   : > { %3603 = dma.hbm_to_vmem [thread:$0]  (!%p4413_p10), %s4722_s5, 4096, %s4466_s19, [#allocation9], %s4318_s13, %s4318_s13, %s4319_s20  }
  0x70   : > { %s4513_s1 = sadd.s32 1, %s4308_s27   ;;  %s32_s15 = sadd.s32 1, %s4304_s26 }
  0x71   : > { %s29_s10 = ssub.s32 %s4308_s27, %s4513_s1  ;;  %p39_p11 = scmp.ne.s32.totalorder %s4304_s26, %s4300_s25 }
  0x72   : > { %p30_p12 = scmp.eq.s32.totalorder %s29_s10, 0  ;;  %p40_p1 = scmp.eq.s32.totalorder %s4308_s27, 0 }
  0x73   : > { %p4735_p4 = scmp.eq.s32.totalorder %s4386_s28, 2  ;;  %p3616_p8 = scmp.lt.s32.totalorder %s4308_s27, 3 }
  0x74   : > { %s4522_s16 = scalar_select %p30_p12, %s4304_s26, %s32_s15  }
  0x75   : > { %p41_p2 = por %p40_p1, %p39_p11  ;;  %p4526_p6 = por %p4735_p4, %p39_p11 }
  0x76   : > { %s277_s18 = sand.u32 1, %s4304_s26   ;;  %s3493_s19 = sshll.u32 %s4308_s27, 7 }
  0x77   : > { %s3160_s21 = sshll.u32 %s277_s18, 3  ;;  %s4536_s11 = scalar_lea.hbm %s4717_s0, %s3493_s19 }
  0x78   : > { %s281_s17 = scalar_lea.vmem [#allocation2], %s3160_s21  ;;  %p4540_p10 = pnand %p3616_p8, %p41_p2 }
  0x79   : > { %s288_s14 = sshll.u32 %s281_s17, 4  ;;  %s4544_s10 = scalar_lea.sflag [#allocation3], %s277_s18  ;;  %s4538_s14 = int_to_ptr.vmem [resolvable:$true] %s288_s14 }
  0x7a   : > { %s4204_s15 = scalar_lea.hbm %s4536_s11, 128  ;;  %p4206_p0 = pneg %p4540_p10 }
  0x7b   : > { %p4205_p13 = scmp.ne.s32.totalorder %s4536_s11, %s4204_s15  ;;  %s4209_s22 = scalar_lea.hbm %s4717_s0, 384 }
  0x7c   : > { %p4210_p7 = scmp.lt.u32.totalorder %s4536_s11, %s4717_s0  ;;  %p4211_p9 = scmp.lt.u32.totalorder %s4209_s22, %s4204_s15 }
  0x7d   : > { %p4207_p3 = pnand %p4206_p0, %p4205_p13  ;;  %p4213_p11 = scmp.lt.u32.totalorder %s4204_s15, %s4536_s11 }
  0x7e   : > { %p4212_p12 = por %p4211_p9, %p4210_p7 }
  0x7f   : > { %p4208_p5 = pneg %p4207_p3 }
  0x80   : > { %p4214_p1 = por %p4213_p11, %p4212_p12 }
  0x82   : > { %p4215_p2 = pnand %p4214_p1, %p4208_p5 }
  0x84   : > { %4218 = shalt.err (!%p4215_p2)
}
  0x85   : > { %s4219_s18 = scalar_lea.vmem %s4538_s14, 128  ;;  %s4320_s21 = smov [#allocation2]  }
  0x86   : > { %p4220_p4 = scmp.ne.s32.totalorder %s4538_s14, %s4219_s18  ;;  %s4224_s19 = sshll.u32 %s4320_s21, 4  ;;  %s4225_s19 = int_to_ptr.vmem [resolvable:$false] %s4224_s19 }
  0x87   : > { %s4226_s23 = scalar_lea.vmem %s4225_s19, 256  ;;  %p4227_p3 = scmp.lt.s32.totalorder %s4538_s14, %s4225_s19 }
  0x88   : > { %p4222_p8 = pnand %p4220_p4, %p4206_p0  ;;  %p4228_p7 = scmp.lt.s32.totalorder %s4226_s23, %s4219_s18 }
  0x8a   : > { %p4223_p13 = pneg %p4222_p8  ;;  %p4229_p9 = por %p4228_p7, %p4227_p3 }
  0x8c   : > { %p4230_p12 = pnand %p4229_p9, %p4223_p13 }
  0x8e   : > { %4233 = shalt.err (!%p4230_p12)
}
  0x8f   : > { %3607 = dma.hbm_to_vmem [thread:$0]  (!%p4540_p10), %s4536_s11, 128, %s4538_s14, %s4544_s10, %s4318_s13, %s4318_s13, %s4319_s20  }
  0x90   : > { %p4738_p0 = scmp.ne.s32.totalorder %s4731_s9, 0 }
  0x91   : > { %s4578_s15 = sand.u32 (!%p4738_p0), 1, %s4300_s25   ;;  %p4739_p5 = scmp.ne.s32.totalorder (!%p4738_p0), %s4729_s30, 0 }
  0x92   : > { %300 = sbr.rel (%p4738_p0) target bundleno = 1362 (0x552), region = 48  ;;  %s3164_s22 = sshll.u32 (!%p4738_p0), %s4578_s15, 3 }
  0x93   : > { %s303_s17 = scalar_lea.sflag (!%p4738_p0), [#allocation3], %s4578_s15  ;;  %s4582_s18 = scalar_lea.vmem (!%p4738_p0), [#allocation2], %s3164_s22 }
  0x99   : > { %4279 = dma.done.wait (%p4739_p5), %s303_s17, 128  }
  0x9a   : > { %4281 = vsyncadd (%p4739_p5), %s303_s17, 4294967168  ;;  %p4740_p10 = scmp.eq.s32.totalorder %s4386_s28, 0 }
  0x9c   : > { %4283 = dma.done.wait (%p4740_p10), [#allocation6], 3200   ;;  %p4741_p11 = pmov %p4740_p10 }
  0x9d   : > { %p4742_p1 = pmov %p4740_p10 }
  0x9e   : > { %4285 = vsyncadd (%p4741_p11), [#allocation6], 4294964096 }
  0x9f   : > { %4287 = dma.done.wait (%p4742_p1), [#allocation9], 36864   ;;  %p4743_p2 = pmov %p4742_p1 }
  0xa0   : > { %v4321_v0 = vmov 0   ;;  %v358_v1 = vld [vmem:[#allocation5] sm:$0xff]  ;;  %v359_v10 = vld [vmem:[#allocation5 + $0x8] sm:$0xff]  ;;  %v360_v21 = vld [vmem:[#allocation5 + $0x10] sm:$0xff]  ;;  %vm549_vm0 = vcmask 392192   ;;  %s3169_s11 = sshll.u32 %s4578_s15, 4 }
  0xa1   : > { %4289 = vsyncadd (%p4743_p2), [#allocation9], 4294930432  ;;  %585 = vmatprep.mubr.bf16.mxu0 %v4321_v0  ;;  %628 = vmatprep.mubr.bf16.mxu1 %v4321_v0  ;;  %v362_v2 = vld [vmem:[#allocation5 + $0x20] sm:$0xff]  ;;  %v363_v11 = vld [vmem:[#allocation5 + $0x28] sm:$0xff]  ;;  %s3494_s14 = sshll.u32 %s4386_s28, 8  ;;  %s352_s29 = scalar_lea.vmem [#allocation11], %s3169_s11 }
  0xa2   : > { %v366_v3 = vld [vmem:[#allocation5 + $0x40] sm:$0xff]  ;;  %v3172_v4 = vcombine.high %v358_v1, %v362_v2  ;;  %v3171_v5 = vcombine.low %v358_v1, %v362_v2  ;;  %v367_v12 = vld [vmem:[#allocation5 + $0x48] sm:$0xff]  ;;  %v3174_v14 = vcombine.high %v359_v10, %v363_v11  ;;  %v3173_v15 = vcombine.low %v359_v10, %v363_v11  ;;  %v364_v22 = vld [vmem:[#allocation5 + $0x30] sm:$0xff]  ;;  %s3042_s10 = sshll.u32 %s352_s29, 4  ;;  %s4672_s23 = scalar_lea.hbm %s4724_s7, %s3494_s14  ;;  %s4674_s10 = int_to_ptr.vmem [resolvable:$true] %s3042_s10 }
  0xa3   : > { %v370_v6 = vld [vmem:[#allocation5 + $0x60] sm:$0xff]  ;;  %v371_v16 = vld [vmem:[#allocation5 + $0x68] sm:$0xff]  ;;  %v368_v26 = vld [vmem:[#allocation5 + $0x50] sm:$0xff]  ;;  %v3176_v28 = vcombine.high %v360_v21, %v364_v22  ;;  %v3175_v33 = vcombine.low %v360_v21, %v364_v22  ;;  %s3029_s22 = scalar_lea.sflag [#allocation4], %s4578_s15  ;;  %s4234_s17 = scalar_lea.vmem %s4674_s10, 256 }
  0xa4   : > { %v374_v7 = vld [vmem:[#allocation5 + $0x80] sm:$0xff]  ;;  %v3180_v8 = vcombine.high %v366_v3, %v370_v6  ;;  %553 = vmatprep.subr.bf16.mxu0 %v3172_v4  ;;  %v3179_v13 = vcombine.low %v366_v3, %v370_v6  ;;  %v3182_v18 = vcombine.high %v367_v12, %v371_v16  ;;  %v375_v19 = vld [vmem:[#allocation5 + $0x88] sm:$0xff]  ;;  %596 = vmatprep.subr.bf16.mxu1 %v3174_v14  ;;  %v372_v27 = vld [vmem:[#allocation5 + $0x70] sm:$0xff]  ;;  %p4235_p4 = scmp.ne.s32.totalorder %s4674_s10, %s4234_s17  ;;  %s4322_s28 = smov [#allocation11]  }
  0xa5   : > { %v378_v9 = vld [vmem:[#allocation5 + $0xa0] sm:$0xff]  ;;  %554 = vmatpush1.bf16.msra.mxu0 %v3171_v5  ;;  %v379_v20 = vld [vmem:[#allocation5 + $0xa8] sm:$0xff]  ;;  %597 = vmatpush1.bf16.msra.mxu1 %v3173_v15  ;;  %v3181_v23 = vcombine.low %v367_v12, %v371_v16  ;;  %v361_v29 = vld [vmem:[#allocation5 + $0x18] sm:$0xff]  ;;  %v3184_v36 = vcombine.high %v368_v26, %v372_v27  ;;  %v3183_v41 = vcombine.low %v368_v26, %v372_v27 }
  0xa6   : > { %555 = vmatprep.subr.bf16.mxu0 %v3180_v8  ;;  %v3188_v17 = vcombine.high %v374_v7, %v378_v9  ;;  %v3187_v24 = vcombine.low %v374_v7, %v378_v9  ;;  %598 = vmatprep.subr.bf16.mxu1 %v3182_v18  ;;  %v3190_v25 = vcombine.high %v375_v19, %v379_v20  ;;  %v365_v30 = vld [vmem:[#allocation5 + $0x38] sm:$0xff]  ;;  %v376_v34 = vld [vmem:[#allocation5 + $0x90] sm:$0xff]  ;;  %p4236_p8 = pnand %p4235_p4, %p4526_p6 }
  0xa7   : > { %v3667_v31 = vld [vmem:[%s4582_s18] sm:$0xff]   ;;  %v3189_v32 = vcombine.low %v375_v19, %v379_v20  ;;  %v3178_v37 = vcombine.high %v361_v29, %v365_v30  ;;  %v3177_v40 = vcombine.low %v361_v29, %v365_v30  ;;  %s4238_s18 = sshll.u32 %s4322_s28, 4  ;;  %s4239_s18 = int_to_ptr.vmem [resolvable:$false] %s4238_s18 }
  0xa8   : > { %v369_v35 = vld [vmem:[#allocation5 + $0x58] sm:$0xff]  ;;  %v380_v39 = vld [vmem:[#allocation5 + $0xb0] sm:$0xff]  ;;  %p4237_p13 = pneg %p4236_p8  ;;  %s4240_s30 = scalar_lea.vmem %s4239_s18, 512 }
  0xa9   : > { %556 = vmatpush1.bf16.msra.mxu0 %v3179_v13  ;;  %599 = vmatpush1.bf16.msra.mxu1 %v3181_v23  ;;  %v373_v38 = vld [vmem:[#allocation5 + $0x78] sm:$0xff]  ;;  %v3192_v44 = vcombine.high %v376_v34, %v380_v39  ;;  %v3191_v47 = vcombine.low %v376_v34, %v380_v39  ;;  %v3673_v52 = vld [vmem:[#allocation8 + $0xc] ss:$16 sps:$4 sm:$0xff]   ;;  %v3671_v54 = vld [vmem:[#allocation8 + $0x8] ss:$16 sps:$4 sm:$0xff]   ;;  %p4241_p3 = scmp.lt.s32.totalorder %s4674_s10, %s4239_s18  ;;  %p4242_p7 = scmp.lt.s32.totalorder %s4240_s30, %s4234_s17 }
  0xaa   : > { %557 = vmatprep.subr.bf16.mxu0 %v3188_v17  ;;  %600 = vmatprep.subr.bf16.mxu1 %v3190_v25  ;;  %v3186_v42 = vcombine.high %v369_v35, %v373_v38  ;;  %v377_v43 = vld [vmem:[#allocation5 + $0x98] sm:$0xff]  ;;  %v3185_v46 = vcombine.low %v369_v35, %v373_v38  ;;  %v3679_v56 = vld [vmem:[#allocation8 + $0x2c] ss:$16 sps:$4 sm:$0xff]   ;;  %v3677_v58 = vld [vmem:[#allocation8 + $0x28] ss:$16 sps:$4 sm:$0xff]  }
  0xab   : > { %v381_v45 = vld [vmem:[#allocation5 + $0xb8] sm:$0xff]  ;;  %v3685_v60 = vld [vmem:[#allocation8 + $0x4c] ss:$16 sps:$4 sm:$0xff]   ;;  %v3683_v62 = vld [vmem:[#allocation8 + $0x48] ss:$16 sps:$4 sm:$0xff]   ;;  %p4243_p9 = por %p4242_p7, %p4241_p3 }
  0xac   : > { %v3194_v48 = vcombine.high %v377_v43, %v381_v45  ;;  %v3670_v49 = vld [vmem:[#allocation8 + $0x4] ss:$16 sps:$4 sm:$0xff]   ;;  %v3193_v50 = vcombine.low %v377_v43, %v381_v45  ;;  %v3668_v51 = vld [vmem:[#allocation8] ss:$16 sps:$4 sm:$0xff]   ;;  %v3689_v2 = vld [vmem:[#allocation8 + $0x68] ss:$16 sps:$4 sm:$0xff]  }
  0xad   : > { %558 = vmatpush1.bf16.msra.mxu0 %v3187_v24  ;;  %601 = vmatpush1.bf16.msra.mxu1 %v3189_v32  ;;  %v3676_v53 = vld [vmem:[#allocation8 + $0x24] ss:$16 sps:$4 sm:$0xff]   ;;  %v3674_v55 = vld [vmem:[#allocation8 + $0x20] ss:$16 sps:$4 sm:$0xff]   ;;  %v3697_v4 = vld [vmem:[#allocation8 + $0x8c] ss:$16 sps:$4 sm:$0xff]   ;;  %p4244_p12 = pnand %p4243_p9, %p4237_p13 }
  0xae   : > { %639 = vmatprep.subr.bf16.mxu0 %v3176_v28  ;;  %682 = vmatprep.subr.bf16.mxu1 %v3178_v37  ;;  %v3682_v57 = vld [vmem:[#allocation8 + $0x44] ss:$16 sps:$4 sm:$0xff]   ;;  %v3680_v59 = vld [vmem:[#allocation8 + $0x40] ss:$16 sps:$4 sm:$0xff]   ;;  %v3695_v6 = vld [vmem:[#allocation8 + $0x88] ss:$16 sps:$4 sm:$0xff]  }
  0xaf   : > { %v3688_v61 = vld [vmem:[#allocation8 + $0x64] ss:$16 sps:$4 sm:$0xff]   ;;  %v3686_v63 = vld [vmem:[#allocation8 + $0x60] ss:$16 sps:$4 sm:$0xff]   ;;  %v3703_v8 = vld [vmem:[#allocation8 + $0xac] ss:$16 sps:$4 sm:$0xff]  }
  0xb0   : > { %3195 = vmatmul.mubr.msk.bf16.vlgmr.msra.gmra.mrb[0].mxu0 %vm549_vm0, %v3667_v31  ;;  %3196 = vmatmul.mubr.msk.bf16.vlgmr.msra.gmra.mrb[0].mxu1 %vm549_vm0, %v3667_v31  ;;  %v3694_v1 = vld [vmem:[#allocation8 + $0x84] ss:$16 sps:$4 sm:$0xff]   ;;  %v3692_v3 = vld [vmem:[#allocation8 + $0x80] ss:$16 sps:$4 sm:$0xff]   ;;  %v3701_v9 = vld [vmem:[#allocation8 + $0xa8] ss:$16 sps:$4 sm:$0xff]  }
  0xb1   : > { %640 = vmatpush1.bf16.msra.mxu0 %v3175_v33  ;;  %671 = vmatprep.mubr.bf16.mxu0 %v4321_v0  ;;  %v3700_v5 = vld [vmem:[#allocation8 + $0xa4] ss:$16 sps:$4 sm:$0xff]   ;;  %v3698_v7 = vld [vmem:[#allocation8 + $0xa0] ss:$16 sps:$4 sm:$0xff]   ;;  %v3709_v12 = vld [vmem:[#allocation8 + $0xcc] ss:$16 sps:$4 sm:$0xff]  }
  0xb2   : > { %641 = vmatprep.subr.bf16.mxu0 %v3184_v36  ;;  %683 = vmatpush1.bf16.msra.mxu1 %v3177_v40  ;;  %v3706_v10 = vld [vmem:[#allocation8 + $0xc4] ss:$16 sps:$4 sm:$0xff]   ;;  %v3704_v11 = vld [vmem:[#allocation8 + $0xc0] ss:$16 sps:$4 sm:$0xff]   ;;  %v3707_v14 = vld [vmem:[#allocation8 + $0xc8] ss:$16 sps:$4 sm:$0xff]  }
  0xb3   : > { %714 = vmatprep.mubr.bf16.mxu1 %v4321_v0  ;;  %684 = vmatprep.subr.bf16.mxu1 %v3186_v42  ;;  %v3691_v0 = vld [vmem:[#allocation8 + $0x6c] ss:$16 sps:$4 sm:$0xff]   ;;  %v3712_v13 = vld [vmem:[#allocation8 + $0xe4] ss:$16 sps:$4 sm:$0xff]   ;;  %v3710_v15 = vld [vmem:[#allocation8 + $0xe0] ss:$16 sps:$4 sm:$0xff]  }
  0xb4   : > { %v3715_v16 = vld [vmem:[#allocation8 + $0xec] ss:$16 sps:$4 sm:$0xff]   ;;  %v3718_v17 = vld [vmem:[#allocation8 + $0x104] ss:$16 sps:$4 sm:$0xff]   ;;  %v3713_v18 = vld [vmem:[#allocation8 + $0xe8] ss:$16 sps:$4 sm:$0xff]  }
  0xb5   : > { %642 = vmatpush1.bf16.msra.mxu0 %v3183_v41  ;;  %v3716_v19 = vld [vmem:[#allocation8 + $0x100] ss:$16 sps:$4 sm:$0xff]   ;;  %v3721_v20 = vld [vmem:[#allocation8 + $0x10c] ss:$16 sps:$4 sm:$0xff]   ;;  %v3724_v21 = vld [vmem:[#allocation8 + $0x124] ss:$16 sps:$4 sm:$0xff]  }
  0xb6   : > { %643 = vmatprep.subr.bf16.mxu0 %v3192_v44  ;;  %685 = vmatpush1.bf16.msra.mxu1 %v3185_v46  ;;  %v3719_v22 = vld [vmem:[#allocation8 + $0x108] ss:$16 sps:$4 sm:$0xff]   ;;  %v3722_v23 = vld [vmem:[#allocation8 + $0x120] ss:$16 sps:$4 sm:$0xff]   ;;  %v3727_v24 = vld [vmem:[#allocation8 + $0x12c] ss:$16 sps:$4 sm:$0xff]  }
  0xb7   : > { %686 = vmatprep.subr.bf16.mxu1 %v3194_v48  ;;  %v3730_v25 = vld [vmem:[#allocation8 + $0x144] ss:$16 sps:$4 sm:$0xff]   ;;  %v3725_v26 = vld [vmem:[#allocation8 + $0x128] ss:$16 sps:$4 sm:$0xff]   ;;  %v3728_v27 = vld [vmem:[#allocation8 + $0x140] ss:$16 sps:$4 sm:$0xff]  }
  0xb8   : > { %v3733_v28 = vld [vmem:[#allocation8 + $0x14c] ss:$16 sps:$4 sm:$0xff]   ;;  %v3736_v29 = vld [vmem:[#allocation8 + $0x164] ss:$16 sps:$4 sm:$0xff]   ;;  %v3731_v30 = vld [vmem:[#allocation8 + $0x148] ss:$16 sps:$4 sm:$0xff]  }
  0xb9   : > { %644 = vmatpush1.bf16.msra.mxu0 %v3191_v47  ;;  %v3739_v32 = vld [vmem:[#allocation8 + $0x16c] ss:$16 sps:$4 sm:$0xff]   ;;  %v3742_v33 = vld [vmem:[#allocation8 + $0x184] ss:$16 sps:$4 sm:$0xff]   ;;  %v3737_v34 = vld [vmem:[#allocation8 + $0x168] ss:$16 sps:$4 sm:$0xff]  }
  0xba   : > { %2307 = vmatprep.subr.bf16.mxu0 %v3670_v49  ;;  %687 = vmatpush1.bf16.msra.mxu1 %v3193_v50  ;;  %v3740_v35 = vld [vmem:[#allocation8 + $0x180] ss:$16 sps:$4 sm:$0xff]   ;;  %v3745_v36 = vld [vmem:[#allocation8 + $0x18c] ss:$16 sps:$4 sm:$0xff]   ;;  %v3748_v37 = vld [vmem:[#allocation8 + $0x1a4] ss:$16 sps:$4 sm:$0xff]  }
  0xbb   : > { %2479 = vmatprep.subr.bf16.mxu1 %v3673_v52  ;;  %v3743_v38 = vld [vmem:[#allocation8 + $0x188] ss:$16 sps:$4 sm:$0xff]   ;;  %v3746_v39 = vld [vmem:[#allocation8 + $0x1a0] ss:$16 sps:$4 sm:$0xff]   ;;  %v3751_v40 = vld [vmem:[#allocation8 + $0x1ac] ss:$16 sps:$4 sm:$0xff]   ;;  %v384_v52 = vlaneseq }
  0xbc   : > { %3197 = vmatmul.mubr.msk.bf16.vlgmr.msra.gmra.mrb[4].mxu0 %vm549_vm0, %v3667_v31  ;;  %v3749_v41 = vld [vmem:[#allocation8 + $0x1a8] ss:$16 sps:$4 sm:$0xff]   ;;  %v3754_v42 = vld [vmem:[#allocation8 + $0x1c4] ss:$16 sps:$4 sm:$0xff]   ;;  %v3757_v43 = vld [vmem:[#allocation8 + $0x1cc] ss:$16 sps:$4 sm:$0xff]  }
  0xbd   : > { %2308 = vmatpush1.bf16.msra.mxu0 %v3668_v51  ;;  %3198 = vmatmul.mubr.msk.bf16.vlgmr.msra.gmra.mrb[4].mxu1 %vm549_vm0, %v3667_v31  ;;  %v3734_v31 = vld [vmem:[#allocation8 + $0x160] ss:$16 sps:$4 sm:$0xff]   ;;  %v3755_v45 = vld [vmem:[#allocation8 + $0x1c8] ss:$16 sps:$4 sm:$0xff]   ;;  %v3760_v46 = vld [vmem:[#allocation8 + $0x1e4] ss:$16 sps:$4 sm:$0xff]  }
  0xbe   : > { %2309 = vmatprep.subr.bf16.mxu0 %v3676_v53  ;;  %2480 = vmatpush1.bf16.msra.mxu1 %v3671_v54  ;;  %v3752_v44 = vld [vmem:[#allocation8 + $0x1c0] ss:$16 sps:$4 sm:$0xff]   ;;  %v3763_v47 = vld [vmem:[#allocation8 + $0x1ec] ss:$16 sps:$4 sm:$0xff]   ;;  %v3761_v49 = vld [vmem:[#allocation8 + $0x1e8] ss:$16 sps:$4 sm:$0xff]  }
  0xbf   : > { %2481 = vmatprep.subr.bf16.mxu1 %v3679_v56  ;;  %v3758_v48 = vld [vmem:[#allocation8 + $0x1e0] ss:$16 sps:$4 sm:$0xff]   ;;  %v3766_v50 = vld [vmem:[#allocation8 + $0x204] ss:$16 sps:$4 sm:$0xff]   ;;  %v3769_v51 = vld [vmem:[#allocation8 + $0x20c] ss:$16 sps:$4 sm:$0xff]  }
  0xc0   : > { %v4605_v53 = vshrl.u32 %v384_v52, 7  ;;  %v3787_v52 = vld [vmem:[#allocation8 + $0x26c] ss:$16 sps:$4 sm:$0xff]  }
  0xc1   : > { %2310 = vmatpush1.bf16.msra.mxu0 %v3674_v55  ;;  %v4608_v55 = vld [vmem:[#allocation7] sm:$0xff] }
  0xc2   : > { %2311 = vmatprep.subr.bf16.mxu0 %v3682_v57  ;;  %2482 = vmatpush1.bf16.msra.mxu1 %v3677_v58  ;;  %v386_v54 = vsub.s32 0, %v4605_v53  ;;  %v390_v56 = vsub.s32 1, %v4605_v53  ;;  %v394_v57 = vsub.s32 2, %v4605_v53 }
  0xc3   : > { %2483 = vmatprep.subr.bf16.mxu1 %v3685_v60 }
  0xc4   : > { %v387_v58 = vrot.slane %v4608_v55, %v386_v54  ;;  %v391_v60 = vrot.slane %v4608_v55, %v390_v56 }
  0xc5   : > { %2312 = vmatpush1.bf16.msra.mxu0 %v3680_v59  ;;  %v398_v59 = vsub.s32 3, %v4605_v53 }
  0xc6   : > { %2313 = vmatprep.subr.bf16.mxu0 %v3688_v61  ;;  %2484 = vmatpush1.bf16.msra.mxu1 %v3683_v62  ;;  %v395_v62 = vrot.slane %v4608_v55, %v394_v57 }
  0xc7   : > { %2485 = vmatprep.subr.bf16.mxu1 %v3691_v0 }
  0xc9   : > { %2314 = vmatpush1.bf16.msra.mxu0 %v3686_v63 }
  0xca   : > { %2315 = vmatprep.subr.bf16.mxu0 %v3694_v1  ;;  %2486 = vmatpush1.bf16.msra.mxu1 %v3689_v2  ;;  %v399_v1 = vrot.slane %v4608_v55, %v398_v59 }
  0xcb   : > { %2487 = vmatprep.subr.bf16.mxu1 %v3697_v4 }
  0xcd   : > { %2316 = vmatpush1.bf16.msra.mxu0 %v3692_v3 }
  0xce   : > { %2317 = vmatprep.subr.bf16.mxu0 %v3700_v5  ;;  %2488 = vmatpush1.bf16.msra.mxu1 %v3695_v6 }
  0xcf   : > { %2489 = vmatprep.subr.bf16.mxu1 %v3703_v8 }
  0xd1   : > { %2318 = vmatpush1.bf16.msra.mxu0 %v3698_v7 }
  0xd2   : > { %2319 = vmatprep.subr.bf16.mxu0 %v3706_v10  ;;  %2490 = vmatpush1.bf16.msra.mxu1 %v3701_v9  ;;  %v402_v10 = vsub.s32 4, %v4605_v53 }
  0xd3   : > { %2491 = vmatprep.subr.bf16.mxu1 %v3709_v12 }
  0xd5   : > { %2320 = vmatpush1.bf16.msra.mxu0 %v3704_v11 }
  0xd6   : > { %2321 = vmatprep.subr.bf16.mxu0 %v3712_v13  ;;  %2492 = vmatpush1.bf16.msra.mxu1 %v3707_v14 }
  0xd7   : > { %2493 = vmatprep.subr.bf16.mxu1 %v3715_v16 }
  0xd9   : > { %2322 = vmatpush1.bf16.msra.mxu0 %v3710_v15  ;;  %v406_v15 = vsub.s32 5, %v4605_v53 }
  0xda   : > { %2323 = vmatprep.subr.bf16.mxu0 %v3718_v17  ;;  %2494 = vmatpush1.bf16.msra.mxu1 %v3713_v18 }
  0xdb   : > { %2495 = vmatprep.subr.bf16.mxu1 %v3721_v20 }
  0xdd   : > { %2324 = vmatpush1.bf16.msra.mxu0 %v3716_v19 }
  0xde   : > { %2325 = vmatprep.subr.bf16.mxu0 %v3724_v21  ;;  %2496 = vmatpush1.bf16.msra.mxu1 %v3719_v22 }
  0xdf   : > { %2497 = vmatprep.subr.bf16.mxu1 %v3727_v24 }
  0xe1   : > { %2326 = vmatpush1.bf16.msra.mxu0 %v3722_v23 }
  0xe2   : > { %2327 = vmatprep.subr.bf16.mxu0 %v3730_v25  ;;  %2498 = vmatpush1.bf16.msra.mxu1 %v3725_v26  ;;  %v3764_v25 = vld [vmem:[#allocation8 + $0x200] ss:$16 sps:$4 sm:$0xff]   ;;  %v3767_v26 = vld [vmem:[#allocation8 + $0x208] ss:$16 sps:$4 sm:$0xff]  }
  0xe3   : > { %2499 = vmatprep.subr.bf16.mxu1 %v3733_v28  ;;  %v3772_v28 = vld [vmem:[#allocation8 + $0x224] ss:$16 sps:$4 sm:$0xff]  }
  0xe5   : > { %2328 = vmatpush1.bf16.msra.mxu0 %v3728_v27 }
  0xe6   : > { %2329 = vmatprep.subr.bf16.mxu0 %v3736_v29  ;;  %2500 = vmatpush1.bf16.msra.mxu1 %v3731_v30  ;;  %v3775_v29 = vld [vmem:[#allocation8 + $0x22c] ss:$16 sps:$4 sm:$0xff]  }
  0xe7   : > { %2501 = vmatprep.subr.bf16.mxu1 %v3739_v32 }
  0xe9   : > { %2330 = vmatpush1.bf16.msra.mxu0 %v3734_v31  ;;  %v403_v31 = vrot.slane %v4608_v55, %v402_v10 }
  0xea   : > { %2331 = vmatprep.subr.bf16.mxu0 %v3742_v33  ;;  %2502 = vmatpush1.bf16.msra.mxu1 %v3737_v34  ;;  %v407_v33 = vrot.slane %v4608_v55, %v406_v15 }
  0xeb   : > { %2503 = vmatprep.subr.bf16.mxu1 %v3745_v36  ;;  %v3773_v36 = vld [vmem:[#allocation8 + $0x228] ss:$16 sps:$4 sm:$0xff]  }
  0xed   : > { %2332 = vmatpush1.bf16.msra.mxu0 %v3740_v35  ;;  %v3770_v35 = vld [vmem:[#allocation8 + $0x220] ss:$16 sps:$4 sm:$0xff]  }
  0xee   : > { %2333 = vmatprep.subr.bf16.mxu0 %v3748_v37  ;;  %2504 = vmatpush1.bf16.msra.mxu1 %v3743_v38  ;;  %v3778_v38 = vld [vmem:[#allocation8 + $0x244] ss:$16 sps:$4 sm:$0xff]  }
  0xef   : > { %2505 = vmatprep.subr.bf16.mxu1 %v3751_v40 }
  0xf1   : > { %2334 = vmatpush1.bf16.msra.mxu0 %v3746_v39  ;;  %v3781_v39 = vld [vmem:[#allocation8 + $0x24c] ss:$16 sps:$4 sm:$0xff]  }
  0xf2   : > { %2506 = vmatpush1.bf16.msra.mxu1 %v3749_v41  ;;  %2335 = vmatprep.subr.bf16.mxu0 %v3754_v42 }
  0xf3   : > { %2507 = vmatprep.subr.bf16.mxu1 %v3757_v43 }
  0xf5   : > { %2336 = vmatpush1.bf16.msra.mxu0 %v3752_v44 }
  0xf6   : > { %2508 = vmatpush1.bf16.msra.mxu1 %v3755_v45  ;;  %2337 = vmatprep.subr.bf16.mxu0 %v3760_v46 }
  0xf7   : > { %2509 = vmatprep.subr.bf16.mxu1 %v3763_v47  ;;  %v3776_v47 = vld [vmem:[#allocation8 + $0x240] ss:$16 sps:$4 sm:$0xff]  }
  0xf9   : > { %2338 = vmatpush1.bf16.msra.mxu0 %v3758_v48  ;;  %v3779_v48 = vld [vmem:[#allocation8 + $0x248] ss:$16 sps:$4 sm:$0xff]  }
  0xfa   : > { %2510 = vmatpush1.bf16.msra.mxu1 %v3761_v49  ;;  %2350 = vmatprep.subr.bf16.mxu0 %v3766_v50 }
  0xfb   : > { %2522 = vmatprep.subr.bf16.mxu1 %v3769_v51  ;;  %v3784_v51 = vld [vmem:[#allocation8 + $0x264] ss:$16 sps:$4 sm:$0xff]  }
 0x183   : > { %v587_v61 = vpop.f32.mrb[0].mxu0  ;;  %v630_v6 = vpop.f32.mrb[0].mxu1 }
 0x184   : > { %v588_v63 = vadd.f32 %v587_v61, %v387_v58  ;;  %v589_v0 = vpop.f32.mrb[1].mxu0  ;;  %v631_v8 = vadd.f32 %v630_v6, %v395_v62  ;;  %v632_v9 = vpop.f32.mrb[1].mxu1  ;;  %v3799_v6 = vld [vmem:[#allocation8 + $0x2ac] ss:$16 sps:$4 sm:$0xff]  }
 0x185   : > { %v590_v2 = vadd.f32 %v589_v0, %v391_v60  ;;  %v591_v3 = vpop.f32.mrb[2].mxu0  ;;  %v633_v13 = vadd.f32 %v632_v9, %v399_v1  ;;  %v634_v14 = vpop.f32.mrb[2].mxu1  ;;  %v410_v9 = vsub.s32 6, %v4605_v53 }
 0x186   : > { %v592_v4 = vadd.f32 %v591_v3, %v387_v58  ;;  %v593_v5 = vpop.f32.mrb[3].mxu0  ;;  %v725_v11 = vmax.f32 %v588_v63, 0.0  ;;  %v727_v18 = vmax.f32 %v631_v8, 0.0  ;;  %v635_v19 = vadd.f32 %v634_v14, %v395_v62  ;;  %v636_v20 = vpop.f32.mrb[3].mxu1  ;;  %v3782_v62 = vld [vmem:[#allocation8 + $0x260] ss:$16 sps:$4 sm:$0xff]  }
 0x187   : > { %v594_v7 = vadd.f32 %v593_v5, %v391_v60  ;;  %v726_v16 = vmax.f32 %v590_v2, 0.0  ;;  %v728_v22 = vmax.f32 %v633_v13, 0.0  ;;  %v637_v23 = vadd.f32 %v636_v20, %v399_v1  ;;  %v3785_v63 = vld [vmem:[#allocation8 + $0x268] ss:$16 sps:$4 sm:$0xff]   ;;  %v3790_v1 = vld [vmem:[#allocation8 + $0x284] ss:$16 sps:$4 sm:$0xff]  }
 0x188   : > { %v733_v12 = vmax.f32 %v592_v4, 0.0  ;;  %v735_v27 = vmax.f32 %v635_v19, 0.0  ;;  %v3793_v2 = vld [vmem:[#allocation8 + $0x28c] ss:$16 sps:$4 sm:$0xff]   ;;  %v3788_v3 = vld [vmem:[#allocation8 + $0x280] ss:$16 sps:$4 sm:$0xff]   ;;  %v411_v15 = vrot.slane %v4608_v55, %v410_v9 }
 0x189   : > { %v734_v17 = vmax.f32 %v594_v7, 0.0  ;;  %v736_v30 = vmax.f32 %v637_v23, 0.0  ;;  %v3791_v4 = vld [vmem:[#allocation8 + $0x288] ss:$16 sps:$4 sm:$0xff]   ;;  %v3796_v5 = vld [vmem:[#allocation8 + $0x2a4] ss:$16 sps:$4 sm:$0xff]  }
 0x18a   : > { %v741_v21 = vpack.c.bf16 %v733_v12, %v725_v11  ;;  %v4628_v32 = vpack.c.bf16 %v735_v27, %v727_v18  ;;  %v3794_v7 = vld [vmem:[#allocation8 + $0x2a0] ss:$16 sps:$4 sm:$0xff]   ;;  %v3797_v8 = vld [vmem:[#allocation8 + $0x2a8] ss:$16 sps:$4 sm:$0xff]   ;;  %v414_v11 = vsub.s32 7, %v4605_v53 }
 0x18b   : > { %v742_v24 = vpack.c.bf16 %v734_v17, %v726_v16  ;;  %v744_v34 = vpack.c.bf16 %v736_v30, %v728_v22  ;;  %v3802_v12 = vld [vmem:[#allocation8 + $0x2c4] ss:$16 sps:$4 sm:$0xff]   ;;  %v3805_v13 = vld [vmem:[#allocation8 + $0x2cc] ss:$16 sps:$4 sm:$0xff]   ;;  %v3800_v18 = vld [vmem:[#allocation8 + $0x2c0] ss:$16 sps:$4 sm:$0xff]  }
 0x18c   : > { %v415_v16 = vrot.slane %v4608_v55, %v414_v11  ;;  %v3803_v19 = vld [vmem:[#allocation8 + $0x2c8] ss:$16 sps:$4 sm:$0xff]   ;;  %v3806_v55 = vld [vmem:[#allocation8 + $0x2e0] ss:$16 sps:$4 sm:$0xff]   ;;  %v3862_v11 = vld [vmem:[#allocation8 + $0x404] ss:$16 sps:$4 sm:$0xff]  }
 0x18d   : > { %2339 = vmatprep.mubr.bf16.mxu0 %v742_v24  ;;  %2511 = vmatprep.mubr.bf16.mxu1 %v742_v24  ;;  %v3808_v24 = vld [vmem:[#allocation8 + $0x2e4] ss:$16 sps:$4 sm:$0xff]   ;;  %v3854_v9 = vld [vmem:[#allocation8 + $0x3e0] ss:$16 sps:$4 sm:$0xff]  }
 0x18e   : > { %2340 = vmatmul.mubr.bf16.vlgmr.msra.gmra.mrb[8].mxu0 %v741_v21  ;;  %2512 = vmatmul.mubr.bf16.vlgmr.msra.gmra.mrb[8].mxu1 %v741_v21 }
 0x18f   : > { %2351 = vmatpush1.bf16.msra.mxu0 %v3764_v25  ;;  %2523 = vmatpush1.bf16.msra.mxu1 %v3767_v26  ;;  %v673_v37 = vpop.f32.mrb[4].mxu0  ;;  %v3811_v25 = vld [vmem:[#allocation8 + $0x2ec] ss:$16 sps:$4 sm:$0xff]  }
 0x190   : > { %2352 = vmatprep.subr.bf16.mxu0 %v3772_v28  ;;  %2524 = vmatprep.subr.bf16.mxu1 %v3775_v29  ;;  %v674_v40 = vadd.f32 %v673_v37, %v403_v31  ;;  %v675_v41 = vpop.f32.mrb[5].mxu0  ;;  %v716_v10 = vpop.f32.mrb[4].mxu1  ;;  %v3812_v37 = vld [vmem:[#allocation8 + $0x300] ss:$16 sps:$4 sm:$0xff]  }
 0x191   : > { %2382 = vmatprep.mubr.bf16.mxu0 %v744_v34  ;;  %2554 = vmatprep.mubr.bf16.mxu1 %v744_v34  ;;  %v676_v42 = vadd.f32 %v675_v41, %v407_v33  ;;  %v677_v43 = vpop.f32.mrb[6].mxu0  ;;  %v718_v14 = vpop.f32.mrb[5].mxu1  ;;  %v717_v20 = vadd.f32 %v716_v10, %v411_v15  ;;  %v3814_v34 = vld [vmem:[#allocation8 + $0x304] ss:$16 sps:$4 sm:$0xff]   ;;  %v3818_v41 = vld [vmem:[#allocation8 + $0x320] ss:$16 sps:$4 sm:$0xff]  }
 0x192   : > { %v729_v44 = vmax.f32 %v674_v40, 0.0  ;;  %v678_v45 = vadd.f32 %v677_v43, %v403_v31  ;;  %v679_v46 = vpop.f32.mrb[7].mxu0  ;;  %v720_v17 = vpop.f32.mrb[6].mxu1  ;;  %v719_v21 = vadd.f32 %v718_v14, %v415_v16  ;;  %v3809_v31 = vld [vmem:[#allocation8 + $0x2e8] ss:$16 sps:$4 sm:$0xff]  }
 0x193   : > { %2353 = vmatpush1.bf16.msra.mxu0 %v3770_v35  ;;  %2525 = vmatpush1.bf16.msra.mxu1 %v3773_v36  ;;  %v730_v49 = vmax.f32 %v676_v42, 0.0  ;;  %v680_v50 = vadd.f32 %v679_v46, %v407_v33  ;;  %v721_v22 = vadd.f32 %v720_v17, %v411_v15  ;;  %v722_v23 = vpop.f32.mrb[7].mxu1  ;;  %v731_v27 = vmax.f32 %v717_v20, 0.0  ;;  %v3817_v35 = vld [vmem:[#allocation8 + $0x30c] ss:$16 sps:$4 sm:$0xff]  }
 0x194   : > { %2354 = vmatprep.subr.bf16.mxu0 %v3778_v38  ;;  %2526 = vmatprep.subr.bf16.mxu1 %v3781_v39  ;;  %v737_v58 = vmax.f32 %v678_v45, 0.0  ;;  %v723_v26 = vadd.f32 %v722_v23, %v415_v16  ;;  %v732_v28 = vmax.f32 %v719_v21, 0.0  ;;  %v3815_v38 = vld [vmem:[#allocation8 + $0x308] ss:$16 sps:$4 sm:$0xff]   ;;  %v3820_v39 = vld [vmem:[#allocation8 + $0x324] ss:$16 sps:$4 sm:$0xff]  }
 0x195   : > { %v738_v60 = vmax.f32 %v680_v50, 0.0  ;;  %v739_v29 = vmax.f32 %v721_v22, 0.0  ;;  %v3823_v40 = vld [vmem:[#allocation8 + $0x32c] ss:$16 sps:$4 sm:$0xff]   ;;  %v3821_v42 = vld [vmem:[#allocation8 + $0x328] ss:$16 sps:$4 sm:$0xff]  }
 0x196   : > { %v4631_v61 = vpack.c.bf16 %v737_v58, %v729_v44  ;;  %v740_v30 = vmax.f32 %v723_v26, 0.0  ;;  %v3826_v43 = vld [vmem:[#allocation8 + $0x344] ss:$16 sps:$4 sm:$0xff]   ;;  %v3829_v44 = vld [vmem:[#allocation8 + $0x34c] ss:$16 sps:$4 sm:$0xff]  }
 0x197   : > { %2355 = vmatpush1.bf16.msra.mxu0 %v3776_v47  ;;  %2527 = vmatpush1.bf16.msra.mxu1 %v3779_v48  ;;  %v4633_v0 = vpack.c.bf16 %v738_v60, %v730_v49  ;;  %v4639_v33 = vpack.c.bf16 %v739_v29, %v731_v27  ;;  %v3824_v45 = vld [vmem:[#allocation8 + $0x340] ss:$16 sps:$4 sm:$0xff]   ;;  %v3827_v46 = vld [vmem:[#allocation8 + $0x348] ss:$16 sps:$4 sm:$0xff]   ;;  %v3832_v47 = vld [vmem:[#allocation8 + $0x364] ss:$16 sps:$4 sm:$0xff]  }
 0x198   : > { %2356 = vmatprep.subr.bf16.mxu0 %v3784_v51  ;;  %2528 = vmatprep.subr.bf16.mxu1 %v3787_v52  ;;  %v4641_v36 = vpack.c.bf16 %v740_v30, %v732_v28  ;;  %v3835_v48 = vld [vmem:[#allocation8 + $0x36c] ss:$16 sps:$4 sm:$0xff]   ;;  %v3830_v49 = vld [vmem:[#allocation8 + $0x360] ss:$16 sps:$4 sm:$0xff]   ;;  %v3833_v50 = vld [vmem:[#allocation8 + $0x368] ss:$16 sps:$4 sm:$0xff]  }
 0x199   : > { %v3838_v51 = vld [vmem:[#allocation8 + $0x384] ss:$16 sps:$4 sm:$0xff]   ;;  %v3841_v52 = vld [vmem:[#allocation8 + $0x38c] ss:$16 sps:$4 sm:$0xff]   ;;  %v3836_v58 = vld [vmem:[#allocation8 + $0x380] ss:$16 sps:$4 sm:$0xff]  }
 0x19a   : > { %v3839_v60 = vld [vmem:[#allocation8 + $0x388] ss:$16 sps:$4 sm:$0xff]   ;;  %v3868_v15 = vld [vmem:[#allocation8 + $0x424] ss:$16 sps:$4 sm:$0xff]   ;;  %v3871_v16 = vld [vmem:[#allocation8 + $0x42c] ss:$16 sps:$4 sm:$0xff]  }
 0x19b   : > { %2357 = vmatpush1.bf16.msra.mxu0 %v3782_v62  ;;  %2529 = vmatpush1.bf16.msra.mxu1 %v3785_v63  ;;  %v3844_v62 = vld [vmem:[#allocation8 + $0x3a4] ss:$16 sps:$4 sm:$0xff]   ;;  %v3847_v63 = vld [vmem:[#allocation8 + $0x3ac] ss:$16 sps:$4 sm:$0xff]   ;;  %v3857_v10 = vld [vmem:[#allocation8 + $0x3e8] ss:$16 sps:$4 sm:$0xff]  }
 0x19c   : > { %2358 = vmatprep.subr.bf16.mxu0 %v3790_v1  ;;  %2530 = vmatprep.subr.bf16.mxu1 %v3793_v2  ;;  %v3842_v1 = vld [vmem:[#allocation8 + $0x3a0] ss:$16 sps:$4 sm:$0xff]   ;;  %v3845_v2 = vld [vmem:[#allocation8 + $0x3a8] ss:$16 sps:$4 sm:$0xff]   ;;  %v3877_v20 = vld [vmem:[#allocation8 + $0x44c] ss:$16 sps:$4 sm:$0xff]  }
 0x19d   : > { %v3863_v14 = vld [vmem:[#allocation8 + $0x408] ss:$16 sps:$4 sm:$0xff]   ;;  %v3866_v17 = vld [vmem:[#allocation8 + $0x420] ss:$16 sps:$4 sm:$0xff]   ;;  %v3880_v23 = vld [vmem:[#allocation8 + $0x464] ss:$16 sps:$4 sm:$0xff]  }
 0x19e   : > { %v3872_v21 = vld [vmem:[#allocation8 + $0x440] ss:$16 sps:$4 sm:$0xff]   ;;  %v3875_v22 = vld [vmem:[#allocation8 + $0x448] ss:$16 sps:$4 sm:$0xff]   ;;  %v3886_v26 = vld [vmem:[#allocation8 + $0x484] ss:$16 sps:$4 sm:$0xff]  }
 0x19f   : > { %2359 = vmatpush1.bf16.msra.mxu0 %v3788_v3  ;;  %2531 = vmatpush1.bf16.msra.mxu1 %v3791_v4  ;;  %v3850_v3 = vld [vmem:[#allocation8 + $0x3c4] ss:$16 sps:$4 sm:$0xff]   ;;  %v3853_v4 = vld [vmem:[#allocation8 + $0x3cc] ss:$16 sps:$4 sm:$0xff]   ;;  %v3884_v28 = vld [vmem:[#allocation8 + $0x480] ss:$16 sps:$4 sm:$0xff]  }
 0x1a0   : > { %2360 = vmatprep.subr.bf16.mxu0 %v3796_v5  ;;  %2532 = vmatprep.subr.bf16.mxu1 %v3799_v6  ;;  %v3848_v5 = vld [vmem:[#allocation8 + $0x3c0] ss:$16 sps:$4 sm:$0xff]   ;;  %v3851_v6 = vld [vmem:[#allocation8 + $0x3c8] ss:$16 sps:$4 sm:$0xff]   ;;  %v3889_v27 = vld [vmem:[#allocation8 + $0x48c] ss:$16 sps:$4 sm:$0xff]  }
 0x1a1   : > { %v3892_v29 = vld [vmem:[#allocation8 + $0x4a4] ss:$16 sps:$4 sm:$0xff]   ;;  %v3895_v30 = vld [vmem:[#allocation8 + $0x4ac] ss:$16 sps:$4 sm:$0xff]  }
 0x1a3   : > { %2361 = vmatpush1.bf16.msra.mxu0 %v3794_v7  ;;  %2533 = vmatpush1.bf16.msra.mxu1 %v3797_v8  ;;  %v3856_v7 = vld [vmem:[#allocation8 + $0x3e4] ss:$16 sps:$4 sm:$0xff]   ;;  %v3859_v8 = vld [vmem:[#allocation8 + $0x3ec] ss:$16 sps:$4 sm:$0xff]  }
 0x1a4   : > { %2362 = vmatprep.subr.bf16.mxu0 %v3802_v12  ;;  %2534 = vmatprep.subr.bf16.mxu1 %v3805_v13  ;;  %v3865_v12 = vld [vmem:[#allocation8 + $0x40c] ss:$16 sps:$4 sm:$0xff]   ;;  %v3860_v13 = vld [vmem:[#allocation8 + $0x400] ss:$16 sps:$4 sm:$0xff]  }
 0x1a7   : > { %2363 = vmatpush1.bf16.msra.mxu0 %v3800_v18  ;;  %2535 = vmatpush1.bf16.msra.mxu1 %v3803_v19  ;;  %v3869_v18 = vld [vmem:[#allocation8 + $0x428] ss:$16 sps:$4 sm:$0xff]   ;;  %v3874_v19 = vld [vmem:[#allocation8 + $0x444] ss:$16 sps:$4 sm:$0xff]  }
 0x1a8   : > { %2364 = vmatprep.subr.bf16.mxu0 %v3808_v24  ;;  %2536 = vmatprep.subr.bf16.mxu1 %v3811_v25  ;;  %v3878_v24 = vld [vmem:[#allocation8 + $0x460] ss:$16 sps:$4 sm:$0xff]   ;;  %v3881_v25 = vld [vmem:[#allocation8 + $0x468] ss:$16 sps:$4 sm:$0xff]  }
 0x1ab   : > { %2365 = vmatpush1.bf16.msra.mxu0 %v3806_v55  ;;  %2537 = vmatpush1.bf16.msra.mxu1 %v3809_v31  ;;  %v3890_v55 = vld [vmem:[#allocation8 + $0x4a0] ss:$16 sps:$4 sm:$0xff]   ;;  %v3893_v31 = vld [vmem:[#allocation8 + $0x4a8] ss:$16 sps:$4 sm:$0xff]  }
 0x1ac   : > { %2366 = vmatprep.subr.bf16.mxu0 %v3814_v34  ;;  %2538 = vmatprep.subr.bf16.mxu1 %v3817_v35  ;;  %v3898_v34 = vld [vmem:[#allocation8 + $0x4c4] ss:$16 sps:$4 sm:$0xff]   ;;  %v3901_v35 = vld [vmem:[#allocation8 + $0x4cc] ss:$16 sps:$4 sm:$0xff]  }
 0x1af   : > { %2367 = vmatpush1.bf16.msra.mxu0 %v3812_v37  ;;  %2539 = vmatpush1.bf16.msra.mxu1 %v3815_v38  ;;  %v3896_v37 = vld [vmem:[#allocation8 + $0x4c0] ss:$16 sps:$4 sm:$0xff]   ;;  %v3899_v38 = vld [vmem:[#allocation8 + $0x4c8] ss:$16 sps:$4 sm:$0xff]  }
 0x1b0   : > { %2368 = vmatprep.subr.bf16.mxu0 %v3820_v39  ;;  %2540 = vmatprep.subr.bf16.mxu1 %v3823_v40  ;;  %v3904_v39 = vld [vmem:[#allocation8 + $0x4e4] ss:$16 sps:$4 sm:$0xff]   ;;  %v3907_v40 = vld [vmem:[#allocation8 + $0x4ec] ss:$16 sps:$4 sm:$0xff]  }
 0x1b3   : > { %2369 = vmatpush1.bf16.msra.mxu0 %v3818_v41  ;;  %2541 = vmatpush1.bf16.msra.mxu1 %v3821_v42  ;;  %v3902_v41 = vld [vmem:[#allocation8 + $0x4e0] ss:$16 sps:$4 sm:$0xff]   ;;  %v3905_v42 = vld [vmem:[#allocation8 + $0x4e8] ss:$16 sps:$4 sm:$0xff]  }
 0x1b4   : > { %2370 = vmatprep.subr.bf16.mxu0 %v3826_v43  ;;  %2542 = vmatprep.subr.bf16.mxu1 %v3829_v44  ;;  %v3910_v43 = vld [vmem:[#allocation8 + $0x504] ss:$16 sps:$4 sm:$0xff]   ;;  %v3913_v44 = vld [vmem:[#allocation8 + $0x50c] ss:$16 sps:$4 sm:$0xff]  }
 0x1b7   : > { %2371 = vmatpush1.bf16.msra.mxu0 %v3824_v45  ;;  %2543 = vmatpush1.bf16.msra.mxu1 %v3827_v46  ;;  %v3908_v45 = vld [vmem:[#allocation8 + $0x500] ss:$16 sps:$4 sm:$0xff]   ;;  %v3911_v46 = vld [vmem:[#allocation8 + $0x508] ss:$16 sps:$4 sm:$0xff]  }
 0x1b8   : > { %2372 = vmatprep.subr.bf16.mxu0 %v3832_v47  ;;  %2544 = vmatprep.subr.bf16.mxu1 %v3835_v48  ;;  %v3916_v47 = vld [vmem:[#allocation8 + $0x524] ss:$16 sps:$4 sm:$0xff]   ;;  %v3919_v48 = vld [vmem:[#allocation8 + $0x52c] ss:$16 sps:$4 sm:$0xff]  }
 0x1bb   : > { %2373 = vmatpush1.bf16.msra.mxu0 %v3830_v49  ;;  %2545 = vmatpush1.bf16.msra.mxu1 %v3833_v50  ;;  %v3914_v49 = vld [vmem:[#allocation8 + $0x520] ss:$16 sps:$4 sm:$0xff]   ;;  %v3917_v50 = vld [vmem:[#allocation8 + $0x528] ss:$16 sps:$4 sm:$0xff]  }
 0x1bc   : > { %2374 = vmatprep.subr.bf16.mxu0 %v3838_v51  ;;  %2546 = vmatprep.subr.bf16.mxu1 %v3841_v52  ;;  %v3922_v51 = vld [vmem:[#allocation8 + $0x544] ss:$16 sps:$4 sm:$0xff]   ;;  %v3925_v52 = vld [vmem:[#allocation8 + $0x54c] ss:$16 sps:$4 sm:$0xff]  }
 0x1bf   : > { %2375 = vmatpush1.bf16.msra.mxu0 %v3836_v58  ;;  %2547 = vmatpush1.bf16.msra.mxu1 %v3839_v60  ;;  %v3920_v58 = vld [vmem:[#allocation8 + $0x540] ss:$16 sps:$4 sm:$0xff]   ;;  %v3923_v60 = vld [vmem:[#allocation8 + $0x548] ss:$16 sps:$4 sm:$0xff]  }
 0x1c0   : > { %2376 = vmatprep.subr.bf16.mxu0 %v3844_v62  ;;  %2548 = vmatprep.subr.bf16.mxu1 %v3847_v63  ;;  %v3928_v62 = vld [vmem:[#allocation8 + $0x564] ss:$16 sps:$4 sm:$0xff]   ;;  %v3931_v63 = vld [vmem:[#allocation8 + $0x56c] ss:$16 sps:$4 sm:$0xff]  }
 0x1c3   : > { %2377 = vmatpush1.bf16.msra.mxu0 %v3842_v1  ;;  %2549 = vmatpush1.bf16.msra.mxu1 %v3845_v2  ;;  %v3926_v1 = vld [vmem:[#allocation8 + $0x560] ss:$16 sps:$4 sm:$0xff]   ;;  %v3929_v2 = vld [vmem:[#allocation8 + $0x568] ss:$16 sps:$4 sm:$0xff]  }
 0x1c4   : > { %2378 = vmatprep.subr.bf16.mxu0 %v3850_v3  ;;  %2550 = vmatprep.subr.bf16.mxu1 %v3853_v4  ;;  %v3934_v3 = vld [vmem:[#allocation8 + $0x584] ss:$16 sps:$4 sm:$0xff]   ;;  %v3937_v4 = vld [vmem:[#allocation8 + $0x58c] ss:$16 sps:$4 sm:$0xff]  }
 0x1c7   : > { %2379 = vmatpush1.bf16.msra.mxu0 %v3848_v5  ;;  %2551 = vmatpush1.bf16.msra.mxu1 %v3851_v6  ;;  %v3932_v5 = vld [vmem:[#allocation8 + $0x580] ss:$16 sps:$4 sm:$0xff]   ;;  %v3935_v6 = vld [vmem:[#allocation8 + $0x588] ss:$16 sps:$4 sm:$0xff]  }
 0x1c8   : > { %2380 = vmatprep.subr.bf16.mxu0 %v3856_v7  ;;  %2552 = vmatprep.subr.bf16.mxu1 %v3859_v8  ;;  %v3940_v7 = vld [vmem:[#allocation8 + $0x5a4] ss:$16 sps:$4 sm:$0xff]   ;;  %v3943_v8 = vld [vmem:[#allocation8 + $0x5ac] ss:$16 sps:$4 sm:$0xff]  }
 0x1cb   : > { %2381 = vmatpush1.bf16.msra.mxu0 %v3854_v9  ;;  %2553 = vmatpush1.bf16.msra.mxu1 %v3857_v10  ;;  %v3938_v9 = vld [vmem:[#allocation8 + $0x5a0] ss:$16 sps:$4 sm:$0xff]   ;;  %v3941_v10 = vld [vmem:[#allocation8 + $0x5a8] ss:$16 sps:$4 sm:$0xff]  }
 0x1cc   : > { %2393 = vmatprep.subr.bf16.mxu0 %v3862_v11  ;;  %2565 = vmatprep.subr.bf16.mxu1 %v3865_v12  ;;  %v3946_v11 = vld [vmem:[#allocation8 + $0x5c4] ss:$16 sps:$4 sm:$0xff]   ;;  %v3949_v12 = vld [vmem:[#allocation8 + $0x5cc] ss:$16 sps:$4 sm:$0xff]  }
 0x1ce   : > { %2383 = vmatmul.mubr.bf16.vlgmr.msra.gmra.mrb[8].mxu0 %v4628_v32  ;;  %2555 = vmatmul.mubr.bf16.vlgmr.msra.gmra.mrb[8].mxu1 %v4628_v32  ;;  %v3883_v32 = vld [vmem:[#allocation8 + $0x46c] ss:$16 sps:$4 sm:$0xff]  }
 0x1cf   : > { %2394 = vmatpush1.bf16.msra.mxu0 %v3860_v13  ;;  %2566 = vmatpush1.bf16.msra.mxu1 %v3863_v14  ;;  %v3944_v13 = vld [vmem:[#allocation8 + $0x5c0] ss:$16 sps:$4 sm:$0xff]   ;;  %v3947_v14 = vld [vmem:[#allocation8 + $0x5c8] ss:$16 sps:$4 sm:$0xff]  }
 0x1d0   : > { %2395 = vmatprep.subr.bf16.mxu0 %v3868_v15  ;;  %2567 = vmatprep.subr.bf16.mxu1 %v3871_v16  ;;  %v3952_v15 = vld [vmem:[#allocation8 + $0x5e4] ss:$16 sps:$4 sm:$0xff]   ;;  %v3955_v16 = vld [vmem:[#allocation8 + $0x5ec] ss:$16 sps:$4 sm:$0xff]  }
 0x1d1   : > { %2425 = vmatprep.mubr.bf16.mxu0 %v4633_v0  ;;  %2597 = vmatprep.mubr.bf16.mxu1 %v4633_v0  ;;  %v3887_v0 = vld [vmem:[#allocation8 + $0x488] ss:$16 sps:$4 sm:$0xff]  }
 0x1d3   : > { %2396 = vmatpush1.bf16.msra.mxu0 %v3866_v17  ;;  %2568 = vmatpush1.bf16.msra.mxu1 %v3869_v18  ;;  %v3950_v17 = vld [vmem:[#allocation8 + $0x5e0] ss:$16 sps:$4 sm:$0xff]   ;;  %v3953_v18 = vld [vmem:[#allocation8 + $0x5e8] ss:$16 sps:$4 sm:$0xff]  }
 0x1d4   : > { %2397 = vmatprep.subr.bf16.mxu0 %v3874_v19  ;;  %2569 = vmatprep.subr.bf16.mxu1 %v3877_v20  ;;  %v3958_v19 = vld [vmem:[#allocation8 + $0x604] ss:$16 sps:$4 sm:$0xff]   ;;  %v3961_v20 = vld [vmem:[#allocation8 + $0x60c] ss:$16 sps:$4 sm:$0xff]  }
 0x1d7   : > { %2398 = vmatpush1.bf16.msra.mxu0 %v3872_v21  ;;  %2570 = vmatpush1.bf16.msra.mxu1 %v3875_v22  ;;  %v3956_v21 = vld [vmem:[#allocation8 + $0x600] ss:$16 sps:$4 sm:$0xff]   ;;  %v3959_v22 = vld [vmem:[#allocation8 + $0x608] ss:$16 sps:$4 sm:$0xff]  }
 0x1d8   : > { %2399 = vmatprep.subr.bf16.mxu0 %v3880_v23  ;;  %2571 = vmatprep.subr.bf16.mxu1 %v3883_v32  ;;  %v3964_v23 = vld [vmem:[#allocation8 + $0x624] ss:$16 sps:$4 sm:$0xff]   ;;  %v3967_v32 = vld [vmem:[#allocation8 + $0x62c] ss:$16 sps:$4 sm:$0xff]  }
 0x1db   : > { %2400 = vmatpush1.bf16.msra.mxu0 %v3878_v24  ;;  %2572 = vmatpush1.bf16.msra.mxu1 %v3881_v25  ;;  %v3962_v24 = vld [vmem:[#allocation8 + $0x620] ss:$16 sps:$4 sm:$0xff]   ;;  %v3965_v25 = vld [vmem:[#allocation8 + $0x628] ss:$16 sps:$4 sm:$0xff]  }
 0x1dc   : > { %2401 = vmatprep.subr.bf16.mxu0 %v3886_v26  ;;  %2573 = vmatprep.subr.bf16.mxu1 %v3889_v27  ;;  %v3970_v26 = vld [vmem:[#allocation8 + $0x644] ss:$16 sps:$4 sm:$0xff]   ;;  %v3973_v27 = vld [vmem:[#allocation8 + $0x64c] ss:$16 sps:$4 sm:$0xff]  }
 0x1df   : > { %2402 = vmatpush1.bf16.msra.mxu0 %v3884_v28  ;;  %2574 = vmatpush1.bf16.msra.mxu1 %v3887_v0  ;;  %v3968_v28 = vld [vmem:[#allocation8 + $0x640] ss:$16 sps:$4 sm:$0xff]   ;;  %v3971_v0 = vld [vmem:[#allocation8 + $0x648] ss:$16 sps:$4 sm:$0xff]  }
 0x1e0   : > { %2403 = vmatprep.subr.bf16.mxu0 %v3892_v29  ;;  %2575 = vmatprep.subr.bf16.mxu1 %v3895_v30  ;;  %v3976_v29 = vld [vmem:[#allocation8 + $0x664] ss:$16 sps:$4 sm:$0xff]   ;;  %v3974_v30 = vld [vmem:[#allocation8 + $0x660] ss:$16 sps:$4 sm:$0xff]  }
 0x1e3   : > { %2404 = vmatpush1.bf16.msra.mxu0 %v3890_v55  ;;  %2576 = vmatpush1.bf16.msra.mxu1 %v3893_v31  ;;  %v3977_v55 = vld [vmem:[#allocation8 + $0x668] ss:$16 sps:$4 sm:$0xff]   ;;  %v3982_v31 = vld [vmem:[#allocation8 + $0x684] ss:$16 sps:$4 sm:$0xff]  }
 0x1e4   : > { %2405 = vmatprep.subr.bf16.mxu0 %v3898_v34  ;;  %2577 = vmatprep.subr.bf16.mxu1 %v3901_v35  ;;  %v3985_v34 = vld [vmem:[#allocation8 + $0x68c] ss:$16 sps:$4 sm:$0xff]   ;;  %v3980_v35 = vld [vmem:[#allocation8 + $0x680] ss:$16 sps:$4 sm:$0xff]  }
 0x1e7   : > { %2406 = vmatpush1.bf16.msra.mxu0 %v3896_v37  ;;  %2578 = vmatpush1.bf16.msra.mxu1 %v3899_v38  ;;  %v3988_v37 = vld [vmem:[#allocation8 + $0x6a4] ss:$16 sps:$4 sm:$0xff]   ;;  %v3991_v38 = vld [vmem:[#allocation8 + $0x6ac] ss:$16 sps:$4 sm:$0xff]  }
 0x1e8   : > { %2407 = vmatprep.subr.bf16.mxu0 %v3904_v39  ;;  %2579 = vmatprep.subr.bf16.mxu1 %v3907_v40  ;;  %v3986_v39 = vld [vmem:[#allocation8 + $0x6a0] ss:$16 sps:$4 sm:$0xff]   ;;  %v3989_v40 = vld [vmem:[#allocation8 + $0x6a8] ss:$16 sps:$4 sm:$0xff]  }
 0x1eb   : > { %2408 = vmatpush1.bf16.msra.mxu0 %v3902_v41  ;;  %2580 = vmatpush1.bf16.msra.mxu1 %v3905_v42  ;;  %v3994_v41 = vld [vmem:[#allocation8 + $0x6c4] ss:$16 sps:$4 sm:$0xff]   ;;  %v3997_v42 = vld [vmem:[#allocation8 + $0x6cc] ss:$16 sps:$4 sm:$0xff]  }
 0x1ec   : > { %2409 = vmatprep.subr.bf16.mxu0 %v3910_v43  ;;  %2581 = vmatprep.subr.bf16.mxu1 %v3913_v44  ;;  %v3992_v43 = vld [vmem:[#allocation8 + $0x6c0] ss:$16 sps:$4 sm:$0xff]   ;;  %v3995_v44 = vld [vmem:[#allocation8 + $0x6c8] ss:$16 sps:$4 sm:$0xff]  }
 0x1ef   : > { %2410 = vmatpush1.bf16.msra.mxu0 %v3908_v45  ;;  %2582 = vmatpush1.bf16.msra.mxu1 %v3911_v46  ;;  %v4000_v45 = vld [vmem:[#allocation8 + $0x6e4] ss:$16 sps:$4 sm:$0xff]   ;;  %v4003_v46 = vld [vmem:[#allocation8 + $0x6ec] ss:$16 sps:$4 sm:$0xff]  }
 0x1f0   : > { %2411 = vmatprep.subr.bf16.mxu0 %v3916_v47  ;;  %2583 = vmatprep.subr.bf16.mxu1 %v3919_v48  ;;  %v3998_v47 = vld [vmem:[#allocation8 + $0x6e0] ss:$16 sps:$4 sm:$0xff]   ;;  %v4001_v48 = vld [vmem:[#allocation8 + $0x6e8] ss:$16 sps:$4 sm:$0xff]  }
 0x1f3   : > { %2412 = vmatpush1.bf16.msra.mxu0 %v3914_v49  ;;  %2584 = vmatpush1.bf16.msra.mxu1 %v3917_v50  ;;  %v4006_v49 = vld [vmem:[#allocation8 + $0x704] ss:$16 sps:$4 sm:$0xff]   ;;  %v4009_v50 = vld [vmem:[#allocation8 + $0x70c] ss:$16 sps:$4 sm:$0xff]  }
 0x1f4   : > { %2413 = vmatprep.subr.bf16.mxu0 %v3922_v51  ;;  %2585 = vmatprep.subr.bf16.mxu1 %v3925_v52  ;;  %v4004_v51 = vld [vmem:[#allocation8 + $0x700] ss:$16 sps:$4 sm:$0xff]   ;;  %v4007_v52 = vld [vmem:[#allocation8 + $0x708] ss:$16 sps:$4 sm:$0xff]  }
 0x1f7   : > { %2414 = vmatpush1.bf16.msra.mxu0 %v3920_v58  ;;  %2586 = vmatpush1.bf16.msra.mxu1 %v3923_v60  ;;  %v4012_v58 = vld [vmem:[#allocation8 + $0x724] ss:$16 sps:$4 sm:$0xff]   ;;  %v4015_v60 = vld [vmem:[#allocation8 + $0x72c] ss:$16 sps:$4 sm:$0xff]  }
 0x1f8   : > { %2415 = vmatprep.subr.bf16.mxu0 %v3928_v62  ;;  %2587 = vmatprep.subr.bf16.mxu1 %v3931_v63  ;;  %v4010_v62 = vld [vmem:[#allocation8 + $0x720] ss:$16 sps:$4 sm:$0xff]   ;;  %v4013_v63 = vld [vmem:[#allocation8 + $0x728] ss:$16 sps:$4 sm:$0xff]  }
 0x1fb   : > { %2416 = vmatpush1.bf16.msra.mxu0 %v3926_v1  ;;  %2588 = vmatpush1.bf16.msra.mxu1 %v3929_v2  ;;  %v4018_v1 = vld [vmem:[#allocation8 + $0x744] ss:$16 sps:$4 sm:$0xff]   ;;  %v4021_v2 = vld [vmem:[#allocation8 + $0x74c] ss:$16 sps:$4 sm:$0xff]  }
 0x1fc   : > { %2417 = vmatprep.subr.bf16.mxu0 %v3934_v3  ;;  %2589 = vmatprep.subr.bf16.mxu1 %v3937_v4  ;;  %v4016_v3 = vld [vmem:[#allocation8 + $0x740] ss:$16 sps:$4 sm:$0xff]   ;;  %v4019_v4 = vld [vmem:[#allocation8 + $0x748] ss:$16 sps:$4 sm:$0xff]  }
 0x1ff   : > { %2418 = vmatpush1.bf16.msra.mxu0 %v3932_v5  ;;  %2590 = vmatpush1.bf16.msra.mxu1 %v3935_v6  ;;  %v4024_v5 = vld [vmem:[#allocation8 + $0x764] ss:$16 sps:$4 sm:$0xff]   ;;  %v4027_v6 = vld [vmem:[#allocation8 + $0x76c] ss:$16 sps:$4 sm:$0xff]  }
 0x200   : > { %2419 = vmatprep.subr.bf16.mxu0 %v3940_v7  ;;  %2591 = vmatprep.subr.bf16.mxu1 %v3943_v8  ;;  %v4022_v7 = vld [vmem:[#allocation8 + $0x760] ss:$16 sps:$4 sm:$0xff]   ;;  %v4025_v8 = vld [vmem:[#allocation8 + $0x768] ss:$16 sps:$4 sm:$0xff]  }
 0x203   : > { %2420 = vmatpush1.bf16.msra.mxu0 %v3938_v9  ;;  %2592 = vmatpush1.bf16.msra.mxu1 %v3941_v10  ;;  %v4030_v9 = vld [vmem:[#allocation8 + $0x784] ss:$16 sps:$4 sm:$0xff]   ;;  %v4033_v10 = vld [vmem:[#allocation8 + $0x78c] ss:$16 sps:$4 sm:$0xff]  }
 0x204   : > { %2421 = vmatprep.subr.bf16.mxu0 %v3946_v11  ;;  %2593 = vmatprep.subr.bf16.mxu1 %v3949_v12  ;;  %v4028_v11 = vld [vmem:[#allocation8 + $0x780] ss:$16 sps:$4 sm:$0xff]   ;;  %v4031_v12 = vld [vmem:[#allocation8 + $0x788] ss:$16 sps:$4 sm:$0xff]  }
 0x207   : > { %2422 = vmatpush1.bf16.msra.mxu0 %v3944_v13  ;;  %2594 = vmatpush1.bf16.msra.mxu1 %v3947_v14  ;;  %v4036_v13 = vld [vmem:[#allocation8 + $0x7a4] ss:$16 sps:$4 sm:$0xff]   ;;  %v4039_v14 = vld [vmem:[#allocation8 + $0x7ac] ss:$16 sps:$4 sm:$0xff]  }
 0x208   : > { %2423 = vmatprep.subr.bf16.mxu0 %v3952_v15  ;;  %2595 = vmatprep.subr.bf16.mxu1 %v3955_v16  ;;  %v4034_v15 = vld [vmem:[#allocation8 + $0x7a0] ss:$16 sps:$4 sm:$0xff]   ;;  %v4037_v16 = vld [vmem:[#allocation8 + $0x7a8] ss:$16 sps:$4 sm:$0xff]  }
 0x20b   : > { %2424 = vmatpush1.bf16.msra.mxu0 %v3950_v17  ;;  %2596 = vmatpush1.bf16.msra.mxu1 %v3953_v18  ;;  %v4042_v17 = vld [vmem:[#allocation8 + $0x7c4] ss:$16 sps:$4 sm:$0xff]   ;;  %v4045_v18 = vld [vmem:[#allocation8 + $0x7cc] ss:$16 sps:$4 sm:$0xff]  }
 0x20c   : > { %2436 = vmatprep.subr.bf16.mxu0 %v3958_v19  ;;  %2608 = vmatprep.subr.bf16.mxu1 %v3961_v20  ;;  %v4040_v19 = vld [vmem:[#allocation8 + $0x7c0] ss:$16 sps:$4 sm:$0xff]   ;;  %v4043_v20 = vld [vmem:[#allocation8 + $0x7c8] ss:$16 sps:$4 sm:$0xff]  }
 0x20e   : > { %2426 = vmatmul.mubr.bf16.vlgmr.msra.gmra.mrb[8].mxu0 %v4631_v61  ;;  %2598 = vmatmul.mubr.bf16.vlgmr.msra.gmra.mrb[8].mxu1 %v4631_v61  ;;  %v3979_v61 = vld [vmem:[#allocation8 + $0x66c] ss:$16 sps:$4 sm:$0xff]  }
 0x20f   : > { %2437 = vmatpush1.bf16.msra.mxu0 %v3956_v21  ;;  %2609 = vmatpush1.bf16.msra.mxu1 %v3959_v22  ;;  %v4048_v21 = vld [vmem:[#allocation8 + $0x7e4] ss:$16 sps:$4 sm:$0xff]   ;;  %v4051_v22 = vld [vmem:[#allocation8 + $0x7ec] ss:$16 sps:$4 sm:$0xff]  }
 0x210   : > { %2438 = vmatprep.subr.bf16.mxu0 %v3964_v23  ;;  %2610 = vmatprep.subr.bf16.mxu1 %v3967_v32  ;;  %v4046_v23 = vld [vmem:[#allocation8 + $0x7e0] ss:$16 sps:$4 sm:$0xff]   ;;  %v4049_v32 = vld [vmem:[#allocation8 + $0x7e8] ss:$16 sps:$4 sm:$0xff]  }
 0x211   : > { %2468 = vmatprep.mubr.bf16.mxu0 %v4641_v36  ;;  %2640 = vmatprep.mubr.bf16.mxu1 %v4641_v36  ;;  %v3983_v36 = vld [vmem:[#allocation8 + $0x688] ss:$16 sps:$4 sm:$0xff]  }
 0x213   : > { %2439 = vmatpush1.bf16.msra.mxu0 %v3962_v24  ;;  %2611 = vmatpush1.bf16.msra.mxu1 %v3965_v25  ;;  %v4052_v24 = vld [vmem:[#allocation10 + $0x40] sm:$0xff]  }
 0x214   : > { %2440 = vmatprep.subr.bf16.mxu0 %v3970_v26  ;;  %2612 = vmatprep.subr.bf16.mxu1 %v3973_v27  ;;  %v4053_v25 = vld [vmem:[#allocation10 + $0xc0] sm:$0xff]  }
 0x215   : > { %v4054_v26 = vld [vmem:[#allocation10] sm:$0xff]  }
 0x216   : > { %v4055_v27 = vld [vmem:[#allocation10 + $0x80] sm:$0xff]  }
 0x217   : > { %2441 = vmatpush1.bf16.msra.mxu0 %v3968_v28  ;;  %2613 = vmatpush1.bf16.msra.mxu1 %v3971_v0  ;;  %v4056_v28 = vld [vmem:[#allocation10 + $0x48] sm:$0xff]  }
 0x218   : > { %2442 = vmatprep.subr.bf16.mxu0 %v3976_v29  ;;  %2614 = vmatprep.subr.bf16.mxu1 %v3979_v61  ;;  %v4057_v0 = vld [vmem:[#allocation10 + $0xc8] sm:$0xff]  }
 0x219   : > { %v4058_v29 = vld [vmem:[#allocation10 + $0x8] sm:$0xff]  }
 0x21a   : > { %v4059_v61 = vld [vmem:[#allocation10 + $0x88] sm:$0xff]  }
 0x21b   : > { %2443 = vmatpush1.bf16.msra.mxu0 %v3974_v30  ;;  %2615 = vmatpush1.bf16.msra.mxu1 %v3977_v55  ;;  %v4060_v30 = vld [vmem:[#allocation10 + $0x50] sm:$0xff]  }
 0x21c   : > { %2444 = vmatprep.subr.bf16.mxu0 %v3982_v31  ;;  %2616 = vmatprep.subr.bf16.mxu1 %v3985_v34  ;;  %v4061_v55 = vld [vmem:[#allocation10 + $0xd0] sm:$0xff]  }
 0x21d   : > { %v4062_v31 = vld [vmem:[#allocation10 + $0x10] sm:$0xff]  }
 0x21e   : > { %v4063_v34 = vld [vmem:[#allocation10 + $0x90] sm:$0xff]  }
 0x21f   : > { %2445 = vmatpush1.bf16.msra.mxu0 %v3980_v35  ;;  %2617 = vmatpush1.bf16.msra.mxu1 %v3983_v36  ;;  %v4064_v35 = vld [vmem:[#allocation10 + $0x58] sm:$0xff]  }
 0x220   : > { %2446 = vmatprep.subr.bf16.mxu0 %v3988_v37  ;;  %2618 = vmatprep.subr.bf16.mxu1 %v3991_v38  ;;  %v4065_v36 = vld [vmem:[#allocation10 + $0xd8] sm:$0xff]   ;;  %v4068_v38 = vld [vmem:[#allocation10 + $0x60] sm:$0xff]  }
 0x221   : > { %v4066_v37 = vld [vmem:[#allocation10 + $0x18] sm:$0xff]  }
 0x223   : > { %2447 = vmatpush1.bf16.msra.mxu0 %v3986_v39  ;;  %2619 = vmatpush1.bf16.msra.mxu1 %v3989_v40  ;;  %v4069_v39 = vld [vmem:[#allocation10 + $0xe0] sm:$0xff]  }
 0x224   : > { %2448 = vmatprep.subr.bf16.mxu0 %v3994_v41  ;;  %2620 = vmatprep.subr.bf16.mxu1 %v3997_v42  ;;  %v4070_v40 = vld [vmem:[#allocation10 + $0x20] sm:$0xff]   ;;  %v4072_v42 = vld [vmem:[#allocation10 + $0x68] sm:$0xff]  }
 0x225   : > { %v4071_v41 = vld [vmem:[#allocation10 + $0xa0] sm:$0xff]  }
 0x227   : > { %2449 = vmatpush1.bf16.msra.mxu0 %v3992_v43  ;;  %2621 = vmatpush1.bf16.msra.mxu1 %v3995_v44  ;;  %v4073_v43 = vld [vmem:[#allocation10 + $0xe8] sm:$0xff]  }
 0x228   : > { %2450 = vmatprep.subr.bf16.mxu0 %v4000_v45  ;;  %2622 = vmatprep.subr.bf16.mxu1 %v4003_v46  ;;  %v4074_v44 = vld [vmem:[#allocation10 + $0x28] sm:$0xff]   ;;  %v4076_v46 = vld [vmem:[#allocation10 + $0x70] sm:$0xff]  }
 0x229   : > { %v4075_v45 = vld [vmem:[#allocation10 + $0xa8] sm:$0xff]  }
 0x22b   : > { %2451 = vmatpush1.bf16.msra.mxu0 %v3998_v47  ;;  %2623 = vmatpush1.bf16.msra.mxu1 %v4001_v48  ;;  %v4077_v47 = vld [vmem:[#allocation10 + $0xf0] sm:$0xff]  }
 0x22c   : > { %2452 = vmatprep.subr.bf16.mxu0 %v4006_v49  ;;  %2624 = vmatprep.subr.bf16.mxu1 %v4009_v50  ;;  %v4078_v48 = vld [vmem:[#allocation10 + $0x30] sm:$0xff]   ;;  %v4080_v50 = vld [vmem:[#allocation10 + $0x78] sm:$0xff]  }
 0x22d   : > { %v4079_v49 = vld [vmem:[#allocation10 + $0xb0] sm:$0xff]  }
 0x22f   : > { %2453 = vmatpush1.bf16.msra.mxu0 %v4004_v51  ;;  %2625 = vmatpush1.bf16.msra.mxu1 %v4007_v52  ;;  %v4081_v51 = vld [vmem:[#allocation10 + $0xf8] sm:$0xff]  }
 0x230   : > { %2454 = vmatprep.subr.bf16.mxu0 %v4012_v58  ;;  %2626 = vmatprep.subr.bf16.mxu1 %v4015_v60  ;;  %v4082_v52 = vld [vmem:[#allocation10 + $0x38] sm:$0xff]   ;;  %v1005_v60 = vld [vmem:[%s4721_s4] sm:$0xf] }
 0x231   : > { %v4083_v58 = vld [vmem:[#allocation10 + $0xb8] sm:$0xff]  }
 0x233   : > { %2455 = vmatpush1.bf16.msra.mxu0 %v4010_v62  ;;  %2627 = vmatpush1.bf16.msra.mxu1 %v4013_v63  ;;  %v1010_v62 = vrot.slane %v1005_v60, %v386_v54  ;;  %v1018_v63 = vrot.slane %v1005_v60, %v394_v57 }
 0x234   : > { %2456 = vmatprep.subr.bf16.mxu0 %v4018_v1  ;;  %2628 = vmatprep.subr.bf16.mxu1 %v4021_v2  ;;  %v1014_v1 = vrot.slane %v1005_v60, %v390_v56  ;;  %v1022_v2 = vrot.slane %v1005_v60, %v398_v59 }
 0x237   : > { %2457 = vmatpush1.bf16.msra.mxu0 %v4016_v3  ;;  %2629 = vmatpush1.bf16.msra.mxu1 %v4019_v4 }
 0x238   : > { %2458 = vmatprep.subr.bf16.mxu0 %v4024_v5  ;;  %2630 = vmatprep.subr.bf16.mxu1 %v4027_v6 }
 0x23b   : > { %2459 = vmatpush1.bf16.msra.mxu0 %v4022_v7  ;;  %2631 = vmatpush1.bf16.msra.mxu1 %v4025_v8 }
 0x23c   : > { %2460 = vmatprep.subr.bf16.mxu0 %v4030_v9  ;;  %2632 = vmatprep.subr.bf16.mxu1 %v4033_v10 }
 0x23f   : > { %2461 = vmatpush1.bf16.msra.mxu0 %v4028_v11  ;;  %2633 = vmatpush1.bf16.msra.mxu1 %v4031_v12 }
 0x240   : > { %2462 = vmatprep.subr.bf16.mxu0 %v4036_v13  ;;  %2634 = vmatprep.subr.bf16.mxu1 %v4039_v14 }
 0x243   : > { %2463 = vmatpush1.bf16.msra.mxu0 %v4034_v15  ;;  %2635 = vmatpush1.bf16.msra.mxu1 %v4037_v16 }
 0x244   : > { %2464 = vmatprep.subr.bf16.mxu0 %v4042_v17  ;;  %2636 = vmatprep.subr.bf16.mxu1 %v4045_v18 }
 0x247   : > { %2465 = vmatpush1.bf16.msra.mxu0 %v4040_v19  ;;  %2637 = vmatpush1.bf16.msra.mxu1 %v4043_v20 }
 0x248   : > { %2466 = vmatprep.subr.bf16.mxu0 %v4048_v21  ;;  %2638 = vmatprep.subr.bf16.mxu1 %v4051_v22 }
 0x24b   : > { %2467 = vmatpush1.bf16.msra.mxu0 %v4046_v23  ;;  %2639 = vmatpush1.bf16.msra.mxu1 %v4049_v32 }
 0x24c   : > { %3495 = vmatprep.subr.bf16.mxu0 %v4052_v24  ;;  %3517 = vmatprep.subr.bf16.mxu1 %v4053_v25 }
 0x24e   : > { %2469 = vmatmul.mubr.bf16.vlgmr.msra.gmra.mrb[8].mxu0 %v4639_v33  ;;  %2641 = vmatmul.mubr.bf16.vlgmr.msra.gmra.mrb[8].mxu1 %v4639_v33  ;;  %v4067_v33 = vld [vmem:[#allocation10 + $0x98] sm:$0xff]  }
 0x24f   : > { %3496 = vmatpush3.bf16.msra.mxu0 %v4054_v26  ;;  %3518 = vmatpush3.bf16.msra.mxu1 %v4055_v27  ;;  %v3455_v27 = vld [vmem:[%s4723_s6] ss:$0 sm:$0xff] }
 0x250   : > { %3497 = vmatprep.subr.bf16.mxu0 %v4056_v28  ;;  %3519 = vmatprep.subr.bf16.mxu1 %v4057_v0 }
 0x253   : > { %3498 = vmatpush3.bf16.msra.mxu0 %v4058_v29  ;;  %3520 = vmatpush3.bf16.msra.mxu1 %v4059_v61 }
 0x254   : > { %3499 = vmatprep.subr.bf16.mxu0 %v4060_v30  ;;  %3521 = vmatprep.subr.bf16.mxu1 %v4061_v55 }
 0x257   : > { %3500 = vmatpush3.bf16.msra.mxu0 %v4062_v31  ;;  %3522 = vmatpush3.bf16.msra.mxu1 %v4063_v34 }
 0x258   : > { %3501 = vmatprep.subr.bf16.mxu0 %v4064_v35  ;;  %3523 = vmatprep.subr.bf16.mxu1 %v4065_v36 }
 0x25b   : > { %3502 = vmatpush3.bf16.msra.mxu0 %v4066_v37  ;;  %3524 = vmatpush3.bf16.msra.mxu1 %v4067_v33 }
 0x25c   : > { %3503 = vmatprep.subr.bf16.mxu0 %v4068_v38  ;;  %3525 = vmatprep.subr.bf16.mxu1 %v4069_v39 }
 0x25f   : > { %3504 = vmatpush3.bf16.msra.mxu0 %v4070_v40  ;;  %3526 = vmatpush3.bf16.msra.mxu1 %v4071_v41 }
 0x260   : > { %3505 = vmatprep.subr.bf16.mxu0 %v4072_v42  ;;  %3527 = vmatprep.subr.bf16.mxu1 %v4073_v43 }
 0x263   : > { %3506 = vmatpush3.bf16.msra.mxu0 %v4074_v44  ;;  %3528 = vmatpush3.bf16.msra.mxu1 %v4075_v45 }
 0x264   : > { %3507 = vmatprep.subr.bf16.mxu0 %v4076_v46  ;;  %3529 = vmatprep.subr.bf16.mxu1 %v4077_v47 }
 0x267   : > { %3508 = vmatpush3.bf16.msra.mxu0 %v4078_v48  ;;  %3530 = vmatpush3.bf16.msra.mxu1 %v4079_v49 }
 0x268   : > { %3509 = vmatprep.subr.bf16.mxu0 %v4080_v50  ;;  %3531 = vmatprep.subr.bf16.mxu1 %v4081_v51 }
 0x26b   : > { %3510 = vmatpush3.bf16.msra.mxu0 %v4082_v52  ;;  %3532 = vmatpush3.bf16.msra.mxu1 %v4083_v58 }
 0x321   : > { %v2470_v3 = vpop.f32.mrb[8].mxu0  ;;  %v2642_v4 = vpop.f32.mrb[8].mxu1 }
 0x322   : > { %v3539_v5 = vadd.f32 %v2470_v3, %v1010_v62  ;;  %v3543_v6 = vadd.f32 %v2642_v4, %v1018_v63  ;;  %v2472_v7 = vpop.f32.mrb[9].mxu0  ;;  %v2644_v8 = vpop.f32.mrb[9].mxu1 }
 0x323   : > { %v3540_v9 = vadd.f32 %v2472_v7, %v1014_v1  ;;  %v3544_v10 = vadd.f32 %v2644_v8, %v1022_v2  ;;  %v2474_v11 = vpop.f32.mrb[10].mxu0  ;;  %v2646_v12 = vpop.f32.mrb[10].mxu1 }
 0x324   : > { %v3541_v54 = vadd.f32 %v2474_v11, %v1010_v62  ;;  %v3545_v13 = vadd.f32 %v2646_v12, %v1018_v63  ;;  %v2476_v14 = vpop.f32.mrb[11].mxu0  ;;  %v2648_v57 = vpop.f32.mrb[11].mxu1  ;;  %v2651_v56 = vmax.f32 %v3539_v5, 0.0  ;;  %v2653_v17 = vmax.f32 %v3543_v6, 0.0 }
 0x325   : > { %v3542_v15 = vadd.f32 %v2476_v14, %v1014_v1  ;;  %v3546_v16 = vadd.f32 %v2648_v57, %v1022_v2  ;;  %v2652_v18 = vmax.f32 %v3540_v9, 0.0  ;;  %v2654_v19 = vmax.f32 %v3544_v10, 0.0 }
 0x326   : > { %v2655_v53 = vmax.f32 %v3541_v54, 0.0  ;;  %v2657_v59 = vmax.f32 %v3545_v13, 0.0 }
 0x327   : > { %v2656_v20 = vmax.f32 %v3542_v15, 0.0  ;;  %v2658_v21 = vmax.f32 %v3546_v16, 0.0 }
 0x328   : > { %v2659_v22 = vpack.c.bf16 %v2655_v53, %v2651_v56  ;;  %v2661_v23 = vpack.c.bf16 %v2657_v59, %v2653_v17 }
 0x329   : > { %v2660_v32 = vpack.c.bf16 %v2656_v20, %v2652_v18  ;;  %v2662_v24 = vpack.c.bf16 %v2658_v21, %v2654_v19 }
 0x32b   : > { %2958 = vmatprep.mubr.bf16.mxu0 %v2660_v32  ;;  %2999 = vmatprep.mubr.bf16.mxu1 %v2662_v24 }
 0x32c   : > { %2959 = vmatmul.mubr.bf16.vlgmr.msra.gmra.mrb[12].mxu0 %v2659_v22  ;;  %3000 = vmatmul.mubr.bf16.vlgmr.msra.gmra.mrb[12].mxu1 %v2661_v23 }
 0x3ff   : > { %v3511_v25 = vpop.f32.mrb[12].mxu0  ;;  %v3533_v26 = vpop.f32.mrb[12].mxu1 }
 0x400   : > { %v3512_v28 = vpop.f32.mrb[13].mxu0  ;;  %v3534_v0 = vpop.f32.mrb[13].mxu1 }
 0x401   : > { %v3513_v29 = vadd.f32 %v3512_v28, %v3511_v25  ;;  %v3535_v61 = vadd.f32 %v3534_v0, %v3533_v26  ;;  %v3514_v30 = vpop.f32.mrb[14].mxu0  ;;  %v3536_v55 = vpop.f32.mrb[14].mxu1 }
 0x402   : > { %v3515_v31 = vpop.f32.mrb[15].mxu0  ;;  %v3537_v34 = vpop.f32.mrb[15].mxu1 }
 0x403   : > { %v2961_v35 = vadd.f32 %v3513_v29, %v3455_v27  ;;  %v3516_v36 = vadd.f32 %v3515_v31, %v3514_v30  ;;  %v3538_v37 = vadd.f32 %v3537_v34, %v3536_v55 }
 0x405   : > { %v2964_v33 = vadd.f32 %v3516_v36, %v3455_v27  ;;  %v3002_v38 = vadd.f32 %v3535_v61, %v2961_v35 }
 0x407   : > { %3008 = vmax.xlane.f32.xlu0 %v3002_v38  ;;  %v3005_v39 = vadd.f32 %v3538_v37, %v2964_v33 }
 0x40b   : > { %3010 = vmax.xlane.f32.xlu0 %v3005_v39 }
 0x494   : > { %v3009_v40 = vpop.xlane.xlu0 %3008 }
 0x495   : > { %v3012_v41 = vsub.f32 %v3002_v38, %v3009_v40 }
 0x497   : > { %v3014_v42 = vmul.f32 1.442695, %v3012_v41 }
 0x498   : > { %v3011_v43 = vpop.xlane.xlu0 %3010 }
 0x499   : > { %4084 = vpow2.f32 %v3014_v42  ;;  %v3013_v44 = vsub.f32 %v3005_v39, %v3011_v43 }
 0x49b   : > { %v3016_v45 = vmul.f32 1.442695, %v3013_v44 }
 0x49d   : > { %4086 = vpow2.f32 %v3016_v45 }
 0x4a3   : > { %v4085_v46 = vpop.eup %4084 }
 0x4a4   : > { %3018 = vadd.xlane.f32.xlu1 %v4085_v46 }
 0x4a7   : > { %v4087_v47 = vpop.eup %4086 }
 0x4a8   : > { %3020 = vadd.xlane.f32.xlu1 %v4087_v47 }
 0x531   : > { %v3019_v48 = vpop.xlane.xlu1 %3018 }
 0x532   : > { %4088 = vrcp.f32 %v3019_v48 }
 0x535   : > { %v3021_v49 = vpop.xlane.xlu1 %3020 }
 0x536   : > { %4090 = vrcp.f32 %v3021_v49 }
 0x53c   : > { %v4089_v50 = vpop.eup %4088 }
 0x53d   : > { %v3023_v51 = vmul.f32 %v4089_v50, %v4085_v46 }
 0x53f   : > { %3026 = vst [vmem:[%s352_s29] sm:$0xff] %v3023_v51 }
 0x540   : > { %v4091_v52 = vpop.eup %4090 }
 0x541   : > { %v3025_v58 = vmul.f32 %v4091_v52, %v4087_v47 }
 0x543   : > { %3027 = vst [vmem:[%s352_s29 + $0x8] sm:$0xff] %v3025_v58 }
 0x544   : > { %4247 = shalt.err (!%p4244_p12)
}
 0x545   : > { %s4248_s9 = scalar_lea.hbm %s4672_s23, 256  ;;  %s4252_s11 = scalar_lea.hbm %s4724_s7, 768 }
 0x546   : > { %p4249_p0 = scmp.ne.s32.totalorder %s4672_s23, %s4248_s9  ;;  %p4253_p11 = scmp.lt.u32.totalorder %s4672_s23, %s4724_s7 }
 0x547   : > { %p4254_p1 = scmp.lt.u32.totalorder %s4252_s11, %s4248_s9  ;;  %p4256_p4 = scmp.lt.u32.totalorder %s4248_s9, %s4672_s23 }
 0x548   : > { %p4250_p5 = pnand %p4249_p0, %p4526_p6 }
 0x549   : > { %p4255_p2 = por %p4254_p1, %p4253_p11 }
 0x54a   : > { %p4251_p10 = pneg %p4250_p5 }
 0x54b   : > { %p4257_p8 = por %p4256_p4, %p4255_p2 }
 0x54d   : > { %p4258_p13 = pnand %p4257_p8, %p4251_p10 }
 0x54f   : > { %4261 = shalt.err (!%p4258_p13)
}
 0x550   : > { %s4323_s21 = smov 128   ;;  %s4324_s19 = smov 8  }
 0x551   : > { %3589 = dma.vmem_to_hbm [thread:$0]  (%p4526_p6), %s4674_s10, 256, %s4672_s23, %s3029_s22, %s4323_s21, %s4323_s21, %s4324_s19  }
 0x552 PF: > { %p3621_p3 = scmp.ge.s32.totalorder %s4308_s27, 2  ;;  %s3057_s17 = sand.u32 1, %s4296_s24  }
 0x553   : > { %p4744_p7 = scmp.ne.s32.totalorder %s4730_s8, 0  ;;  %s3058_s28 = scalar_lea.sflag [#allocation4], %s3057_s17 }
 0x555   : > { %p3609_p9 = pnand %p3621_p3, %p4744_p7 }
 0x557   : > { %4291 = dma.done.wait (!%p3609_p9), %s3058_s28, 256  }
 0x558   : > { %4293 = vsyncadd (!%p3609_p9), %s3058_s28, 4294967040  ;;  %p22_p12 = scmp.ge.s32.totalorder %s4513_s1, 5   ;;  %s4745_s24 = smov %s4300_s25 }
 0x559   : > { %s4746_s25 = smov %s4304_s26  ;;  %s4747_s26 = smov %s4522_s16 }
 0x55a   : > { %s4748_s27 = smov %s4513_s1  ;;  %24 = sbr.rel (!%p22_p12) target bundleno = 9 (0x9), region = 109 }
 0x561   :  { %3063 = vsyncpa [#allocation3], 1 }
 0x562   :  { %3065 = vsyncpa [#allocation3 + $0x1], 1 }
 0x563   :  { %3066 = vsyncpa [#allocation6], 1 }
 0x564   :  { %3067 = vsyncpa [#allocation9], 1 }
 0x565   :  { %3068 = vsyncpa [#allocation4], 1 }
 0x566   :  { %3070 = vsyncpa [#allocation4 + $0x1], 1 }

</bundles_post_ra>
